<compile_context>
chip_gen: v7x
topology: tpu7x:2x2x1
jax: 0.10.0
libtpu: 0.0.40
codegen_flags: <defaults>
</compile_context>

<pallas_src>
import numpy as np
import jax
import jax.numpy as jnp
from jax.experimental import pallas as pl
from jax.experimental.pallas import tpu as pltpu


# ------------------------------------------------------------------ wrapper + kernel
def _cnn_forward_impl(x, params):
    """Pallas implementation of CNN.forward.  x: (B, L, C_in0) float32."""
    w1, b1, w2, b2, wl, bl = params
    bsz, seq_len, c_in0 = x.shape
    k, _, c_out0 = w1.shape
    k2, _, c_out1 = w2.shape
    pool = 3                              # nn.MaxPool1d(3): kernel=stride=3, floor

    l1 = seq_len - (k - 1)                # conv1 output length (1980)
    p1_len = l1 // pool                   # pool1 output length (660)
    l2 = p1_len - (k2 - 1)                # conv2 output length (658)
    p2 = l2 // pool                       # pool2 output length (219)
    assert wl.shape == (1, c_out1 * p2)

    n_s = pool + (k2 - 1)                 # pool1 positions needed per final pos (5)
    n_u = pool * n_s                      # conv1 positions needed per final pos (15)
    stride = pool * pool                  # conv1-position stride between final pos (9)
    p2p = ((p2 + 127) // 128) * 128       # lane-pad pooled length 219 -> 256

    # ---- batch blocking (>=2 grid steps when bsz>=2 so both v7x TCs are used) ----
    bblk = min(8, max(1, bsz // 2))
    n_blk = -(-bsz // bblk)
    b_pad = n_blk * bblk

    # ---- trace-time data prep (tiny XLA ops), bf16 to halve DMA bytes -------------
    xb = x.astype(jnp.bfloat16)
    if b_pad != bsz:
        xb = jnp.pad(xb, ((0, b_pad - bsz), (0, 0), (0, 0)))

    # conv1 im2col (taps flattened k-major) + phase decomposition, lane-dense:
    # xc[b, kk*c_in0 + c, u*p2p + p] = x[b, stride*p + u + kk, c]
    xw = jnp.concatenate([xb[:, kk:kk + l1, :] for kk in range(k)], axis=-1)
    ph = [xw[:, u:u + stride * (p2 - 1) + 1:stride, :] for u in range(n_u)]
    xc = jnp.stack(ph, axis=1)                                   # (Bp, n_u, p2, k*cin)
    xc = jnp.swapaxes(xc, 2, 3)                                  # (Bp, n_u, k*cin, p2)
    xc = jnp.pad(xc, ((0, 0), (0, 0), (0, 0), (0, p2p - p2)))    # zero-pad lanes
    xc = jnp.swapaxes(xc, 1, 2)                                  # (Bp, k*cin, n_u, p2p)
    xc = xc.reshape(b_pad, k * c_in0, n_u * p2p)                 # (Bp, 12, 3840)

    # weights: bf16 for MXU operands, f32 for everything element-wise
    w1t = w1.reshape(k * c_in0, c_out0).T.astype(jnp.bfloat16)       # (8, 12)
    w2t = w2.reshape(k2 * c_out0, c_out1).T.astype(jnp.bfloat16)     # (256, 24)
    b1c = b1.reshape(c_out0, 1).astype(jnp.float32)                  # (8, 1)
    b2c = b2.reshape(c_out1, 1).astype(jnp.float32)                  # (256, 1)
    # fold torch's (B, C, L).view(B, -1) channel-major flatten into the Linear weight
    wl2d = jnp.pad(wl.reshape(c_out1, p2),
                   ((0, 0), (0, p2p - p2))).astype(jnp.float32)      # (256, 256)
    blc = bl.reshape(1, 1).astype(jnp.float32)

    def kernel(x_ref, w1_ref, b1_ref, w2_ref, b2_ref, wl_ref, bl_ref, o_ref):
        w1v = w1_ref[...]            # (c_out0, k*c_in0)  bf16
        b1v = b1_ref[...]            # (c_out0, 1)        f32
        w2v = w2_ref[...]            # (c_out1, k2*c_out0) bf16
        b2v = b2_ref[...]            # (c_out1, 1)        f32
        wlv = wl_ref[...]            # (c_out1, p2p)      f32 (zero-padded columns)

        outs = []
        for bi in range(bblk):
            xe = x_ref[bi]                                         # (k*cin, n_u*p2p) bf16
            # conv1 + ReLU for ALL 15 phases / all final positions in one matmul.
            c1 = jnp.dot(w1v, xe, preferred_element_type=jnp.float32)
            c1 = jnp.maximum(c1 + b1v, 0.0)                        # (c_out0, n_u*p2p) f32

            def phase(u):                                          # aligned lane slice
                return c1[:, u * p2p:(u + 1) * p2p]                # (c_out0, p2p)

            # MaxPool1d(3) after conv1: p1[s][c, p] == pool1_out[3p + s, c]
            p1 = [jnp.maximum(jnp.maximum(phase(pool * s), phase(pool * s + 1)),
                              phase(pool * s + 2)) for s in range(n_s)]

            # conv2: merge the k2=3 taps (K=24) and the 3 pool2 phases (N=3*p2p)
            # into a single bf16 MXU matmul.
            lhs = jnp.concatenate(
                [jnp.concatenate([p1[r + kk] for kk in range(k2)], axis=0)
                 for r in range(pool)], axis=1).astype(jnp.bfloat16)   # (24, 3*p2p)
            z = jnp.dot(w2v, lhs, preferred_element_type=jnp.float32)   # (256, 3*p2p)
            z = jnp.maximum(z + b2v, 0.0)                                # f32

            # MaxPool1d(3) after conv2: element-wise max of the 3 phase slabs.
            h = z[:, 0:p2p]
            for r in range(1, pool):
                h = jnp.maximum(h, z[:, r * p2p:(r + 1) * p2p])          # (256, p2p)

            # Linear (flatten already folded into wlv; padded columns are zero there).
            v = jnp.sum(h * wlv, axis=1, keepdims=True)                  # (256, 1)
            outs.append(jnp.sum(v, axis=0, keepdims=True))               # (1, 1)

        o_ref[...] = jnp.concatenate(outs, axis=0) + bl_ref[...]         # (bblk, 1)

    out = pl.pallas_call(
        kernel,
        out_shape=jax.ShapeDtypeStruct((n_blk, bblk, 1), jnp.float32),
        grid=(n_blk,),
        in_specs=[
            pl.BlockSpec((bblk, k * c_in0, n_u * p2p), lambda g: (g, 0, 0)),
            pl.BlockSpec((c_out0, k * c_in0), lambda g: (0, 0)),
            pl.BlockSpec((c_out0, 1), lambda g: (0, 0)),
            pl.BlockSpec((c_out1, k2 * c_out0), lambda g: (0, 0)),
            pl.BlockSpec((c_out1, 1), lambda g: (0, 0)),
            pl.BlockSpec((c_out1, p2p), lambda g: (0, 0)),
            pl.BlockSpec((1, 1), lambda g: (0, 0)),
        ],
        out_specs=pl.BlockSpec((None, bblk, 1), lambda g: (g, 0, 0)),
        compiler_params=pltpu.CompilerParams(
            dimension_semantics=("parallel",),
            vmem_limit_bytes=32 * 1024 * 1024,   # v7x-safe budget
        ),
    )(xc, w1t, b1c, w2t, b2c, wl2d, blc)

    return out.reshape(b_pad, 1)[:bsz]


cnn_forward = jax.jit(_cnn_forward_impl)


# ------------------------------------------------------------------ XLA reference
@jax.jit
def reference_forward(x, params):
    """Pure-XLA replica of the PyTorch module (used only to verify the kernel)."""
    w1, b1, w2, b2, wl, bl = params
    h = jnp.transpose(x, (0, 2, 1))                          # (B, C, L) — torch NCL

    def block(h, w, b):
        wt = jnp.transpose(w, (2, 1, 0))                     # (C_out, C_in, K)
        y = jax.lax.conv_general_dilated(
            h, wt, window_strides=(1,), padding="VALID",
            dimension_numbers=("NCH", "OIH", "NCH"),
            precision=jax.lax.Precision.HIGHEST)
        y = jax.nn.relu(y + b.reshape(1, -1, 1))
        return jax.lax.reduce_window(
            y, -jnp.inf, jax.lax.max,
            window_dimensions=(1, 1, 3), window_strides=(1, 1, 3),
            padding="VALID")

    h = block(h, w1, b1)
    h = block(h, w2, b2)
    flat = h.reshape(h.shape[0], -1)
    return jnp.sum(flat * wl, axis=1, keepdims=True) + bl


if __name__ == "__main__":
    batch = 2
    in_channels = (4, 8)
    out_channels = (8, 256)
    kernel_size = (3, 3)
    seq_len = 1982                         # -> pooled length 219, as the Linear implies
    feat = out_channels[1] * 219           # 56064 == 1 * 256 * 219

    key = jax.random.PRNGKey(0)
    kw1, kb1, kw2, kb2, kwl, kbl, kx = jax.random.split(key, 7)

    def uniform(k, shape, fan_in):
        bound = 1.0 / np.sqrt(fan_in)
        return jax.random.uniform(k, shape, jnp.float32, -bound, bound)

    w1 = uniform(kw1, (kernel_size[0], in_channels[0], out_channels[0]),
                 in_channels[0] * kernel_size[0])
    b1 = uniform(kb1, (1, out_channels[0]), in_channels[0] * kernel_size[0])
    w2 = uniform(kw2, (kernel_size[1], in_channels[1], out_channels[1]),
                 in_channels[1] * kernel_size[1])
    b2 = uniform(kb2, (1, out_channels[1]), in_channels[1] * kernel_size[1])
    wl = uniform(kwl, (1, feat), feat)
    bl = uniform(kbl, (1, 1), feat)
    params = (w1, b1, w2, b2, wl, bl)

    x = jax.random.uniform(kx, (batch, seq_len, in_channels[0]),
                           jnp.float32, -1.0, 1.0)

    out = jax.block_until_ready(cnn_forward(x, params))
    assert out.shape == (batch, 1) and out.dtype == jnp.float32

    ref = jax.block_until_ready(reference_forward(x, params))
    np.testing.assert_allclose(np.asarray(out), np.asarray(ref),
                               rtol=2e-2, atol=2e-2)
    print("KERNEL_OK")
</pallas_src>

<mosaic_0001>
module attributes {stable_mosaic.version = 11 : i64} {
  func.func @kernel(%arg0: i32, %arg1: memref<1x12x3840xbf16, #tpu.memory_space<vmem>>, %arg2: memref<8x12xbf16, #tpu.memory_space<vmem>>, %arg3: memref<8x1xf32, #tpu.memory_space<vmem>>, %arg4: memref<256x24xbf16, #tpu.memory_space<vmem>>, %arg5: memref<256x1xf32, #tpu.memory_space<vmem>>, %arg6: memref<256x256xf32, #tpu.memory_space<vmem>>, %arg7: memref<1x1xf32, #tpu.memory_space<vmem>>, %arg8: memref<1x1x1xf32, #tpu.memory_space<vmem>>) attributes {dimension_semantics = [#tpu.dimension_semantics<parallel>], iteration_bounds = array<i64: 2>, scalar_prefetch = 0 : i64, scratch_operands = 0 : i64, tpu.core_type = #tpu.core_type<tc>, window_params = [{transform_indices = @transform_0, window_bounds = array<i64: 1, 12, 3840>}, {pipeline_mode = #tpu.pipeline_mode<synchronous>, transform_indices = @transform_1, window_bounds = array<i64: 8, 12>}, {pipeline_mode = #tpu.pipeline_mode<synchronous>, transform_indices = @transform_2, window_bounds = array<i64: 8, 1>}, {pipeline_mode = #tpu.pipeline_mode<synchronous>, transform_indices = @transform_3, window_bounds = array<i64: 256, 24>}, {pipeline_mode = #tpu.pipeline_mode<synchronous>, transform_indices = @transform_4, window_bounds = array<i64: 256, 1>}, {pipeline_mode = #tpu.pipeline_mode<synchronous>, transform_indices = @transform_5, window_bounds = array<i64: 256, 256>}, {pipeline_mode = #tpu.pipeline_mode<synchronous>, transform_indices = @transform_6, window_bounds = array<i64: 1, 1>}, {transform_indices = @transform_7, window_bounds = array<i64: 1, 1, 1>}]} {
    %c0 = arith.constant 0 : index
    %c0_0 = arith.constant 0 : index
    %0 = vector.load %arg2[%c0, %c0_0] : memref<8x12xbf16, #tpu.memory_space<vmem>>, vector<8x12xbf16>
    %c0_1 = arith.constant 0 : index
    %c0_2 = arith.constant 0 : index
    %1 = vector.load %arg3[%c0_1, %c0_2] : memref<8x1xf32, #tpu.memory_space<vmem>>, vector<8x1xf32>
    %c0_3 = arith.constant 0 : index
    %c0_4 = arith.constant 0 : index
    %2 = vector.load %arg4[%c0_3, %c0_4] : memref<256x24xbf16, #tpu.memory_space<vmem>>, vector<256x24xbf16>
    %c0_5 = arith.constant 0 : index
    %c0_6 = arith.constant 0 : index
    %3 = vector.load %arg5[%c0_5, %c0_6] : memref<256x1xf32, #tpu.memory_space<vmem>>, vector<256x1xf32>
    %c0_7 = arith.constant 0 : index
    %c0_8 = arith.constant 0 : index
    %4 = vector.load %arg6[%c0_7, %c0_8] : memref<256x256xf32, #tpu.memory_space<vmem>>, vector<256x256xf32>
    %c0_9 = arith.constant 0 : index
    %c0_10 = arith.constant 0 : index
    %c0_11 = arith.constant 0 : index
    %5 = vector.load %arg1[%c0_9, %c0_10, %c0_11] : memref<1x12x3840xbf16, #tpu.memory_space<vmem>>, vector<1x12x3840xbf16>
    %6 = vector.shape_cast %5 : vector<1x12x3840xbf16> to vector<12x3840xbf16>
    %cst = arith.constant dense<0.000000e+00> : vector<8x3840xf32>
    %7 = tpu.matmul %0, %6, %cst {dimension_numbers = #tpu.dot_dimension_numbers<[1], [0], [0], [1], [0, 0, 1, 1], [], []>} : vector<8x12xbf16>, vector<12x3840xbf16>, vector<8x3840xf32> -> vector<8x3840xf32>
    %8 = vector.broadcast %1 : vector<8x1xf32> to vector<8x3840xf32>
    %9 = arith.addf %7, %8 : vector<8x3840xf32>
    %cst_12 = arith.constant 0.000000e+00 : f32
    %10 = vector.broadcast %cst_12 : f32 to vector<8x3840xf32>
    %11 = arith.maximumf %9, %10 : vector<8x3840xf32>
    %12 = vector.extract_strided_slice %11 {offsets = [0, 0], sizes = [8, 256], strides = [1, 1]} : vector<8x3840xf32> to vector<8x256xf32>
    %13 = vector.extract_strided_slice %11 {offsets = [0, 256], sizes = [8, 256], strides = [1, 1]} : vector<8x3840xf32> to vector<8x256xf32>
    %14 = arith.maximumf %12, %13 : vector<8x256xf32>
    %15 = vector.extract_strided_slice %11 {offsets = [0, 512], sizes = [8, 256], strides = [1, 1]} : vector<8x3840xf32> to vector<8x256xf32>
    %16 = arith.maximumf %14, %15 : vector<8x256xf32>
    %17 = vector.extract_strided_slice %11 {offsets = [0, 768], sizes = [8, 256], strides = [1, 1]} : vector<8x3840xf32> to vector<8x256xf32>
    %18 = vector.extract_strided_slice %11 {offsets = [0, 1024], sizes = [8, 256], strides = [1, 1]} : vector<8x3840xf32> to vector<8x256xf32>
    %19 = arith.maximumf %17, %18 : vector<8x256xf32>
    %20 = vector.extract_strided_slice %11 {offsets = [0, 1280], sizes = [8, 256], strides = [1, 1]} : vector<8x3840xf32> to vector<8x256xf32>
    %21 = arith.maximumf %19, %20 : vector<8x256xf32>
    %22 = vector.extract_strided_slice %11 {offsets = [0, 1536], sizes = [8, 256], strides = [1, 1]} : vector<8x3840xf32> to vector<8x256xf32>
    %23 = vector.extract_strided_slice %11 {offsets = [0, 1792], sizes = [8, 256], strides = [1, 1]} : vector<8x3840xf32> to vector<8x256xf32>
    %24 = arith.maximumf %22, %23 : vector<8x256xf32>
    %25 = vector.extract_strided_slice %11 {offsets = [0, 2048], sizes = [8, 256], strides = [1, 1]} : vector<8x3840xf32> to vector<8x256xf32>
    %26 = arith.maximumf %24, %25 : vector<8x256xf32>
    %27 = vector.extract_strided_slice %11 {offsets = [0, 2304], sizes = [8, 256], strides = [1, 1]} : vector<8x3840xf32> to vector<8x256xf32>
    %28 = vector.extract_strided_slice %11 {offsets = [0, 2560], sizes = [8, 256], strides = [1, 1]} : vector<8x3840xf32> to vector<8x256xf32>
    %29 = arith.maximumf %27, %28 : vector<8x256xf32>
    %30 = vector.extract_strided_slice %11 {offsets = [0, 2816], sizes = [8, 256], strides = [1, 1]} : vector<8x3840xf32> to vector<8x256xf32>
    %31 = arith.maximumf %29, %30 : vector<8x256xf32>
    %32 = vector.extract_strided_slice %11 {offsets = [0, 3072], sizes = [8, 256], strides = [1, 1]} : vector<8x3840xf32> to vector<8x256xf32>
    %33 = vector.extract_strided_slice %11 {offsets = [0, 3328], sizes = [8, 256], strides = [1, 1]} : vector<8x3840xf32> to vector<8x256xf32>
    %34 = arith.maximumf %32, %33 : vector<8x256xf32>
    %35 = vector.extract_strided_slice %11 {offsets = [0, 3584], sizes = [8, 256], strides = [1, 1]} : vector<8x3840xf32> to vector<8x256xf32>
    %36 = arith.maximumf %34, %35 : vector<8x256xf32>
    %37 = tpu.concatenate %16, %21, %26 in 0 : vector<8x256xf32>, vector<8x256xf32>, vector<8x256xf32> -> vector<24x256xf32>
    %38 = tpu.concatenate %21, %26, %31 in 0 : vector<8x256xf32>, vector<8x256xf32>, vector<8x256xf32> -> vector<24x256xf32>
    %39 = tpu.concatenate %26, %31, %36 in 0 : vector<8x256xf32>, vector<8x256xf32>, vector<8x256xf32> -> vector<24x256xf32>
    %40 = tpu.concatenate %37, %38, %39 in 1 : vector<24x256xf32>, vector<24x256xf32>, vector<24x256xf32> -> vector<24x768xf32>
    %41 = arith.truncf %40 : vector<24x768xf32> to vector<24x768xbf16>
    %cst_13 = arith.constant dense<0.000000e+00> : vector<256x768xf32>
    %42 = tpu.matmul %2, %41, %cst_13 {dimension_numbers = #tpu.dot_dimension_numbers<[1], [0], [0], [1], [0, 0, 1, 1], [], []>} : vector<256x24xbf16>, vector<24x768xbf16>, vector<256x768xf32> -> vector<256x768xf32>
    %43 = vector.broadcast %3 : vector<256x1xf32> to vector<256x768xf32>
    %44 = arith.addf %42, %43 : vector<256x768xf32>
    %cst_14 = arith.constant 0.000000e+00 : f32
    %45 = vector.broadcast %cst_14 : f32 to vector<256x768xf32>
    %46 = arith.maximumf %44, %45 : vector<256x768xf32>
    %47 = vector.extract_strided_slice %46 {offsets = [0, 0], sizes = [256, 256], strides = [1, 1]} : vector<256x768xf32> to vector<256x256xf32>
    %48 = vector.extract_strided_slice %46 {offsets = [0, 256], sizes = [256, 256], strides = [1, 1]} : vector<256x768xf32> to vector<256x256xf32>
    %49 = arith.maximumf %47, %48 : vector<256x256xf32>
    %50 = vector.extract_strided_slice %46 {offsets = [0, 512], sizes = [256, 256], strides = [1, 1]} : vector<256x768xf32> to vector<256x256xf32>
    %51 = arith.maximumf %49, %50 : vector<256x256xf32>
    %52 = arith.mulf %51, %4 : vector<256x256xf32>
    %cst_15 = arith.constant dense<0.000000e+00> : vector<256xf32>
    %53 = vector.multi_reduction <add>, %52, %cst_15 [1] : vector<256x256xf32> to vector<256xf32>
    %54 = vector.shape_cast %53 : vector<256xf32> to vector<256x1xf32>
    %cst_16 = arith.constant dense<0.000000e+00> : vector<1xf32>
    %55 = vector.multi_reduction <add>, %54, %cst_16 [0] : vector<256x1xf32> to vector<1xf32>
    %56 = vector.shape_cast %55 : vector<1xf32> to vector<1x1xf32>
    %c0_17 = arith.constant 0 : index
    %c0_18 = arith.constant 0 : index
    %57 = vector.load %arg7[%c0_17, %c0_18] : memref<1x1xf32, #tpu.memory_space<vmem>>, vector<1x1xf32>
    %58 = arith.addf %56, %57 : vector<1x1xf32>
    %c0_19 = arith.constant 0 : index
    %c0_20 = arith.constant 0 : index
    %c0_21 = arith.constant 0 : index
    %59 = vector.load %arg8[%c0_19, %c0_20, %c0_21] : memref<1x1x1xf32, #tpu.memory_space<vmem>>, vector<1x1x1xf32>
    %60 = vector.shape_cast %59 : vector<1x1x1xf32> to vector<1x1xf32>
    %61 = vector.shape_cast %58 : vector<1x1xf32> to vector<1x1x1xf32>
    tpu.vector_store %arg8[%c0_19, %c0_20, %c0_21], %61 {strides = array<i32>} : memref<1x1x1xf32, #tpu.memory_space<vmem>>, vector<1x1x1xf32>,
    return
  }
  func.func @transform_0(%arg0: i32) -> (i32, i32, i32) {
    %c0_i32 = arith.constant 0 : i32
    %c0_i32_0 = arith.constant 0 : i32
    %c0_i32_1 = arith.constant 0 : i32
    return %arg0, %c0_i32, %c0_i32_0 : i32, i32, i32
  }
  func.func @transform_1(%arg0: i32) -> (i32, i32) {
    %c0_i32 = arith.constant 0 : i32
    %c0_i32_0 = arith.constant 0 : i32
    %c0_i32_1 = arith.constant 0 : i32
    return %c0_i32, %c0_i32_0 : i32, i32
  }
  func.func @transform_2(%arg0: i32) -> (i32, i32) {
    %c0_i32 = arith.constant 0 : i32
    %c0_i32_0 = arith.constant 0 : i32
    %c0_i32_1 = arith.constant 0 : i32
    return %c0_i32, %c0_i32_0 : i32, i32
  }
  func.func @transform_3(%arg0: i32) -> (i32, i32) {
    %c0_i32 = arith.constant 0 : i32
    %c0_i32_0 = arith.constant 0 : i32
    %c0_i32_1 = arith.constant 0 : i32
    return %c0_i32, %c0_i32_0 : i32, i32
  }
  func.func @transform_4(%arg0: i32) -> (i32, i32) {
    %c0_i32 = arith.constant 0 : i32
    %c0_i32_0 = arith.constant 0 : i32
    %c0_i32_1 = arith.constant 0 : i32
    return %c0_i32, %c0_i32_0 : i32, i32
  }
  func.func @transform_5(%arg0: i32) -> (i32, i32) {
    %c0_i32 = arith.constant 0 : i32
    %c0_i32_0 = arith.constant 0 : i32
    %c0_i32_1 = arith.constant 0 : i32
    return %c0_i32, %c0_i32_0 : i32, i32
  }
  func.func @transform_6(%arg0: i32) -> (i32, i32) {
    %c0_i32 = arith.constant 0 : i32
    %c0_i32_0 = arith.constant 0 : i32
    %c0_i32_1 = arith.constant 0 : i32
    return %c0_i32, %c0_i32_0 : i32, i32
  }
  func.func @transform_7(%arg0: i32) -> (i32, i32, i32) {
    %c0_i32 = arith.constant 0 : i32
    %c0_i32_0 = arith.constant 0 : i32
    %c0_i32_1 = arith.constant 0 : i32
    return %arg0, %c0_i32, %c0_i32_0 : i32, i32, i32
  }
}

</mosaic_0001>

<bundles_post_ra>
// kernel: _cnn_forward_impl.1
= control target key start
LH: loop header
LB: loop body
LE: loop exit
PB: predicated region body
PF: predicated region fallthrough
CT: control target
= control target key end

     0   :  { %s3054_s26 = smov 0   ;;  %s4644_s0 = inlined_call_operand.vmem [shape: bf16[2,12,3840], index: 0, kind: input, shape index: {}]   ;;  %s4645_s1 = inlined_call_operand.vmem [shape: bf16[8,12], index: 1, kind: input, shape index: {}]   ;;  %s4646_s2 = inlined_call_operand.vmem [shape: f32[8,1], index: 2, kind: input, shape index: {}]   ;;  %s4647_s3 = inlined_call_operand.vmem [shape: bf16[256,24], index: 3, kind: input, shape index: {}]   ;;  %s4648_s4 = inlined_call_operand.vmem [shape: f32[256,1], index: 4, kind: input, shape index: {}]   ;;  %s4649_s5 = inlined_call_operand.vmem [shape: f32[256,256], index: 5, kind: input, shape index: {}]   ;;  %s4650_s6 = inlined_call_operand.<no memory space> [shape: f32[1,1], index: 6, kind: input, shape index: {}]   ;;  %s4651_s7 = inlined_call_operand.vmem [shape: f32[2,1,1], index: 7, kind: output, shape index: {}]  }
   0x1   :  { %v12_v0 = vstv %s4650_s6 }
   0x2   :  { %13 = vst [vmem:[#allocation2] sm:$0x1] %v12_v0 }
   0x3 LB: > { %s2790_s27 = sadd.s32 4294967295, %s3008_s26   ;;  %p2794_p0 = scmp.ge.s32.totalorder %s3008_s26, 1  ;;  %s3008_s26 = sphi %s3054_s26, %s19_s26  }
   0x4   : > { %p239_p1 = scmp.lt.s32.totalorder %s3008_s26, 3 }
   0x6   : > { %p240_p2 = pnand %p2794_p0, %p239_p1 }
   0x8   : > { %243 = sbr.rel (%p240_p2) target bundleno = 866 (0x362), region = 48 }
   0xf   : > { %p269_p3 = scmp.lt.s32.totalorder %s2790_s27, 1  ;;  %v3010_v1 = vmov 0   ;;  %v279_v2 = vld [vmem:[%s4646_s2] sm:$0xff]  ;;  %vm567_vm0 = vcmask 1045504   ;;  %vm563_vm1 = vcmask 97280   ;;  %v315_v4 = vld [vmem:[%s4648_s4 + $0x18] sm:$0xff] }
  0x10   : > { %690 = vmatprep.mubr.bf16.mxu0 %v3010_v1  ;;  %731 = vmatprep.mubr.bf16.mxu1 %v3010_v1  ;;  %v312_v3 = vld [vmem:[%s4648_s4] sm:$0xff]  ;;  %v317_v21 = vld [vmem:[%s4648_s4 + $0x28] sm:$0xff]  ;;  %v319_v28 = vld [vmem:[%s4648_s4 + $0x38] sm:$0xff]  ;;  %vm1624_vm2 = vcmask 1043456   ;;  %vm1575_vm3 = vcmask 195584   ;;  %vm2741_vm4 = vcmask 0  }
  0x11   : > { %s4875_s27 = smov (!%p269_p3, %s2790_s27), 1  ;;  %2939 = vset.pattern.permute.xlu0 %v3010_v1  ;;  %2940 = vset.pattern.permute.xlu1 %v3010_v1  ;;  %v3092_v9 = vld [vmem:[%s4645_s1] sm:$0xf]  ;;  %v321_v36 = vld [vmem:[%s4648_s4 + $0x48] sm:$0xff]  ;;  %v323_v41 = vld [vmem:[%s4648_s4 + $0x58] sm:$0xff] }
  0x12   : > { %440 = vperm.xlu0 %2939, %v279_v2   ;;  %s2929_s29 = smul.u32 240, %s4875_s27  ;;  %v325_v48 = vld [vmem:[%s4648_s4 + $0x68] sm:$0xff]  ;;  %v327_v54 = vld [vmem:[%s4648_s4 + $0x78] sm:$0xff]  ;;  %s276_s18 = scalar_lea.vmem %s4651_s7, %s4875_s27 }
  0x13   : > { %v329_v56 = vld [vmem:[%s4648_s4 + $0x88] sm:$0xff]  ;;  %v331_v58 = vld [vmem:[%s4648_s4 + $0x98] sm:$0xff] }
  0x14   : > { %s3078_s11 = scalar_lea.vmem %s4644_s0, %s2929_s29  ;;  %v333_v59 = vld [vmem:[%s4648_s4 + $0xa8] sm:$0xff]  ;;  %v335_v60 = vld [vmem:[%s4648_s4 + $0xb8] sm:$0xff] }
  0x15   : > { %v2941_v5 = vld [vmem:[%s3078_s11 + $0x4] ss:$120 sps:$4 sm:$0x3f]   ;;  %v2945_v7 = vld [vmem:[%s3078_s11] ss:$120 sps:$4 sm:$0x3f]  }
  0x16   : > { %1337 = vperm.xlu0 %2939, %v312_v3   ;;  %v2943_v6 = vld [vmem:[%s3078_s11 + $0xc] ss:$120 sps:$4 sm:$0x3f]   ;;  %2826 = vmatprep.subr.msk.bf16.mxu0 %vm567_vm0, %v2941_v5  ;;  %v2946_v8 = vld [vmem:[%s3078_s11 + $0x8] ss:$120 sps:$4 sm:$0x3f]  }
  0x17   : > { %2828 = vmatprep.subr.msk.bf16.mxu1 %vm567_vm0, %v2943_v6  ;;  %v2947_v10 = vld [vmem:[%s3078_s11 + $0x14] ss:$120 sps:$4 sm:$0x3f]   ;;  %v569_v11 = vsel %vm567_vm0, %v2945_v7, 0  ;;  %v575_v12 = vsel %vm567_vm0, %v2946_v8, 0  ;;  %v339_v62 = vld [vmem:[%s4648_s4 + $0xd8] sm:$0xff] }
  0x18   : > { %659 = vmatpush1.bf16.msra.mxu0 %v569_v11  ;;  %700 = vmatpush1.bf16.msra.mxu1 %v575_v12  ;;  %v2949_v13 = vld [vmem:[%s3078_s11 + $0x1c] ss:$120 sps:$4 sm:$0x3f]   ;;  %v2951_v14 = vld [vmem:[%s3078_s11 + $0x10] ss:$120 sps:$4 sm:$0x3f]  }
  0x19   : > { %2830 = vmatprep.subr.msk.bf16.mxu0 %vm567_vm0, %v2947_v10  ;;  %v2952_v15 = vld [vmem:[%s3078_s11 + $0x18] ss:$120 sps:$4 sm:$0x3f]   ;;  %2832 = vmatprep.subr.msk.bf16.mxu1 %vm567_vm0, %v2949_v13  ;;  %v581_v16 = vsel %vm567_vm0, %v2951_v14, 0  ;;  %v337_v61 = vld [vmem:[%s4648_s4 + $0xc8] sm:$0xff]  ;;  %v320_v6 = vld [vmem:[%s4648_s4 + $0x40] sm:$0xff] }
  0x1a   : > { %1352 = vperm.xlu0 %2939, %v315_v4   ;;  %v2953_v17 = vld [vmem:[%s3078_s11 + $0x24] ss:$120 sps:$4 sm:$0x3f]   ;;  %v587_v18 = vsel %vm567_vm0, %v2952_v15, 0  ;;  %v341_v63 = vld [vmem:[%s4648_s4 + $0xe8] sm:$0xff]  ;;  %v314_v3 = vld [vmem:[%s4648_s4 + $0x10] sm:$0xff] }
  0x1b   : > { %2827 = vmatmul.mubr.msk.bf16.vlgmr.msra.gmra.mrb[0].mxu0 %vm563_vm1, %v3092_v9  ;;  %2829 = vmatmul.mubr.msk.bf16.vlgmr.msra.gmra.mrb[0].mxu1 %vm563_vm1, %v3092_v9  ;;  %v2955_v19 = vld [vmem:[%s3078_s11 + $0x2c] ss:$120 sps:$4 sm:$0x3f]   ;;  %v2957_v20 = vld [vmem:[%s3078_s11 + $0x20] ss:$120 sps:$4 sm:$0x3f]  }
  0x1c   : > { %741 = vmatpush1.bf16.msra.mxu0 %v581_v16  ;;  %782 = vmatpush1.bf16.msra.mxu1 %v587_v18  ;;  %v2958_v22 = vld [vmem:[%s3078_s11 + $0x28] ss:$120 sps:$4 sm:$0x3f]   ;;  %v2959_v23 = vld [vmem:[%s3078_s11 + $0x34] ss:$120 sps:$4 sm:$0x3f]  }
  0x1d   : > { %772 = vmatprep.mubr.bf16.mxu0 %v3010_v1  ;;  %813 = vmatprep.mubr.bf16.mxu1 %v3010_v1  ;;  %v593_v24 = vsel %vm567_vm0, %v2957_v20, 0  ;;  %v599_v25 = vsel %vm567_vm0, %v2958_v22, 0  ;;  %v2961_v26 = vld [vmem:[%s3078_s11 + $0x3c] ss:$120 sps:$4 sm:$0x3f]   ;;  %v313_v2 = vld [vmem:[%s4648_s4 + $0x8] sm:$0xff] }
  0x1e   : > { %2834 = vmatprep.subr.msk.bf16.mxu0 %vm567_vm0, %v2953_v17  ;;  %2836 = vmatprep.subr.msk.bf16.mxu1 %vm567_vm0, %v2955_v19  ;;  %v2963_v27 = vld [vmem:[%s3078_s11 + $0x30] ss:$120 sps:$4 sm:$0x3f]   ;;  %v2965_v32 = vld [vmem:[%s3078_s11 + $0x44] ss:$120 sps:$4 sm:$0x3f]  }
  0x1f   : > { %1362 = vperm.xlu0 %2939, %v317_v21   ;;  %v2964_v29 = vld [vmem:[%s3078_s11 + $0x38] ss:$120 sps:$4 sm:$0x3f]   ;;  %v605_v30 = vsel %vm567_vm0, %v2963_v27, 0  ;;  %1342 = vperm.xlu1 %2940, %v313_v2   ;;  %v316_v4 = vld [vmem:[%s4648_s4 + $0x20] sm:$0xff] }
  0x20   : > { %v611_v31 = vsel %vm567_vm0, %v2964_v29, 0  ;;  %v2967_v33 = vld [vmem:[%s3078_s11 + $0x4c] ss:$120 sps:$4 sm:$0x3f]   ;;  %v343_v0 = vld [vmem:[%s4648_s4 + $0xf8] sm:$0xff]  ;;  %v318_v5 = vld [vmem:[%s4648_s4 + $0x30] sm:$0xff] }
  0x21   : > { %v2969_v34 = vld [vmem:[%s3078_s11 + $0x40] ss:$120 sps:$4 sm:$0x3f]   ;;  %v2971_v39 = vld [vmem:[%s3078_s11 + $0x54] ss:$120 sps:$4 sm:$0x3f]  }
  0x22   : > { %v2970_v35 = vld [vmem:[%s3078_s11 + $0x48] ss:$120 sps:$4 sm:$0x3f]   ;;  %v617_v37 = vsel %vm567_vm0, %v2969_v34, 0  ;;  %v322_v7 = vld [vmem:[%s4648_s4 + $0x50] sm:$0xff] }
  0x23   : > { %2831 = vmatmul.mubr.msk.bf16.vlgmr.msra.gmra.mrb[4].mxu0 %vm563_vm1, %v3092_v9  ;;  %2833 = vmatmul.mubr.msk.bf16.vlgmr.msra.gmra.mrb[4].mxu1 %vm563_vm1, %v3092_v9  ;;  %v623_v38 = vsel %vm567_vm0, %v2970_v35, 0  ;;  %v2973_v40 = vld [vmem:[%s3078_s11 + $0x5c] ss:$120 sps:$4 sm:$0x3f]   ;;  %v324_v8 = vld [vmem:[%s4648_s4 + $0x60] sm:$0xff] }
  0x24   : > { %823 = vmatpush1.bf16.msra.mxu0 %v593_v24  ;;  %864 = vmatpush1.bf16.msra.mxu1 %v599_v25  ;;  %v2975_v42 = vld [vmem:[%s3078_s11 + $0x50] ss:$120 sps:$4 sm:$0x3f]   ;;  %v2977_v46 = vld [vmem:[%s3078_s11 + $0x64] ss:$120 sps:$4 sm:$0x3f]  }
  0x25   : > { %854 = vmatprep.mubr.bf16.mxu0 %v3010_v1  ;;  %895 = vmatprep.mubr.bf16.mxu1 %v3010_v1  ;;  %v2976_v43 = vld [vmem:[%s3078_s11 + $0x58] ss:$120 sps:$4 sm:$0x3f]   ;;  %v629_v44 = vsel %vm567_vm0, %v2975_v42, 0  ;;  %v328_v34 = vld [vmem:[%s4648_s4 + $0x80] sm:$0xff] }
  0x26   : > { %2838 = vmatprep.subr.msk.bf16.mxu0 %vm567_vm0, %v2959_v23  ;;  %2840 = vmatprep.subr.msk.bf16.mxu1 %vm567_vm0, %v2961_v26  ;;  %v635_v45 = vsel %vm567_vm0, %v2976_v43, 0  ;;  %v2979_v47 = vld [vmem:[%s3078_s11 + $0x6c] ss:$120 sps:$4 sm:$0x3f]   ;;  %v326_v16 = vld [vmem:[%s4648_s4 + $0x70] sm:$0xff] }
  0x27   : > { %1372 = vperm.xlu0 %2939, %v319_v28   ;;  %v2981_v49 = vld [vmem:[%s3078_s11 + $0x60] ss:$120 sps:$4 sm:$0x3f]   ;;  %v2983_v53 = vld [vmem:[%s3078_s11 + $0x74] ss:$120 sps:$4 sm:$0x3f]   ;;  %1347 = vperm.xlu1 %2940, %v314_v3  }
  0x28   : > { %v2982_v50 = vld [vmem:[%s3078_s11 + $0x68] ss:$120 sps:$4 sm:$0x3f]   ;;  %v641_v51 = vsel %vm567_vm0, %v2981_v49, 0 }
  0x29   : > { %v647_v52 = vsel %vm567_vm0, %v2982_v50, 0  ;;  %v2985_v55 = vld [vmem:[%s3078_s11 + $0x70] ss:$120 sps:$4 sm:$0x3f]  }
  0x2a   : > { %v653_v57 = vsel %vm567_vm0, %v2985_v55, 0 }
  0x2b   : > { %2835 = vmatmul.mubr.msk.bf16.vlgmr.msra.gmra.mrb[8].mxu0 %vm563_vm1, %v3092_v9  ;;  %2837 = vmatmul.mubr.msk.bf16.vlgmr.msra.gmra.mrb[8].mxu1 %vm563_vm1, %v3092_v9 }
  0x2c   : > { %905 = vmatpush1.bf16.msra.mxu0 %v605_v30  ;;  %946 = vmatpush1.bf16.msra.mxu1 %v611_v31 }
  0x2d   : > { %936 = vmatprep.mubr.bf16.mxu0 %v3010_v1  ;;  %977 = vmatprep.mubr.bf16.mxu1 %v3010_v1 }
  0x2e   : > { %2842 = vmatprep.subr.msk.bf16.mxu0 %vm567_vm0, %v2965_v32  ;;  %2844 = vmatprep.subr.msk.bf16.mxu1 %vm567_vm0, %v2967_v33 }
  0x2f   : > { %1382 = vperm.xlu0 %2939, %v321_v36   ;;  %1357 = vperm.xlu1 %2940, %v316_v4  }
  0x33   : > { %2839 = vmatmul.mubr.msk.bf16.vlgmr.msra.gmra.mrb[12].mxu0 %vm563_vm1, %v3092_v9  ;;  %2841 = vmatmul.mubr.msk.bf16.vlgmr.msra.gmra.mrb[12].mxu1 %vm563_vm1, %v3092_v9 }
  0x34   : > { %987 = vmatpush1.bf16.msra.mxu0 %v617_v37  ;;  %1028 = vmatpush1.bf16.msra.mxu1 %v623_v38 }
  0x35   : > { %1018 = vmatprep.mubr.bf16.mxu0 %v3010_v1  ;;  %1059 = vmatprep.mubr.bf16.mxu1 %v3010_v1 }
  0x36   : > { %2846 = vmatprep.subr.msk.bf16.mxu0 %vm567_vm0, %v2971_v39  ;;  %2848 = vmatprep.subr.msk.bf16.mxu1 %vm567_vm0, %v2973_v40 }
  0x37   : > { %1392 = vperm.xlu0 %2939, %v323_v41   ;;  %1367 = vperm.xlu1 %2940, %v318_v5  }
  0x3b   : > { %2843 = vmatmul.mubr.msk.bf16.vlgmr.msra.gmra.mrb[16].mxu0 %vm563_vm1, %v3092_v9  ;;  %2845 = vmatmul.mubr.msk.bf16.vlgmr.msra.gmra.mrb[16].mxu1 %vm563_vm1, %v3092_v9 }
  0x3c   : > { %1069 = vmatpush1.bf16.msra.mxu0 %v629_v44  ;;  %1110 = vmatpush1.bf16.msra.mxu1 %v635_v45 }
  0x3d   : > { %1100 = vmatprep.mubr.bf16.mxu0 %v3010_v1  ;;  %1141 = vmatprep.mubr.bf16.mxu1 %v3010_v1 }
  0x3e   : > { %2850 = vmatprep.subr.msk.bf16.mxu0 %vm567_vm0, %v2977_v46  ;;  %2852 = vmatprep.subr.msk.bf16.mxu1 %vm567_vm0, %v2979_v47 }
  0x3f   : > { %1402 = vperm.xlu0 %2939, %v325_v48   ;;  %1377 = vperm.xlu1 %2940, %v320_v6  }
  0x43   : > { %2847 = vmatmul.mubr.msk.bf16.vlgmr.msra.gmra.mrb[20].mxu0 %vm563_vm1, %v3092_v9  ;;  %2849 = vmatmul.mubr.msk.bf16.vlgmr.msra.gmra.mrb[20].mxu1 %vm563_vm1, %v3092_v9 }
  0x44   : > { %1151 = vmatpush1.bf16.msra.mxu0 %v641_v51  ;;  %1192 = vmatpush1.bf16.msra.mxu1 %v647_v52  ;;  %v330_v52 = vld [vmem:[%s4648_s4 + $0x90] sm:$0xff] }
  0x45   : > { %1182 = vmatprep.mubr.bf16.mxu0 %v3010_v1  ;;  %1223 = vmatprep.mubr.bf16.mxu1 %v3010_v1 }
  0x46   : > { %2854 = vmatprep.subr.msk.bf16.mxu0 %vm567_vm0, %v2983_v53  ;;  %1412 = vperm.xlu0 %2939, %v327_v54  }
  0x47   : > { %1387 = vperm.xlu1 %2940, %v322_v7  }
  0x4a   : > { %1422 = vperm.xlu0 %2939, %v329_v56  }
  0x4b   : > { %2851 = vmatmul.mubr.msk.bf16.vlgmr.msra.gmra.mrb[24].mxu0 %vm563_vm1, %v3092_v9  ;;  %2853 = vmatmul.mubr.msk.bf16.vlgmr.msra.gmra.mrb[24].mxu1 %vm563_vm1, %v3092_v9 }
  0x4c   : > { %1233 = vmatpush1.bf16.msra.mxu0 %v653_v57  ;;  %1264 = vmatprep.mubr.bf16.mxu0 %v3010_v1 }
  0x4d   : > { %1745 = vmatprep.mubr.bf16.mxu1 %v3010_v1  ;;  %1397 = vperm.xlu1 %2940, %v324_v8  }
  0x4e   : > { %1432 = vperm.xlu0 %2939, %v331_v58  }
  0x51   : > { %1407 = vperm.xlu1 %2940, %v326_v16  }
  0x52   : > { %1442 = vperm.xlu0 %2939, %v333_v59  }
  0x53   : > { %2855 = vmatmul.mubr.msk.bf16.vlgmr.msra.gmra.mrb[28].mxu0 %vm563_vm1, %v3092_v9 }
  0x54   : > { %1675 = vmatprep.mubr.bf16.mxu0 %v3010_v1 }
  0x55   : > { %1417 = vperm.xlu1 %2940, %v328_v34  }
  0x56   : > { %1452 = vperm.xlu0 %2939, %v335_v60  }
  0x59   : > { %1427 = vperm.xlu1 %2940, %v330_v52  }
  0x5a   : > { %1462 = vperm.xlu0 %2939, %v337_v61  }
  0x5e   : > { %1472 = vperm.xlu0 %2939, %v339_v62  }
  0x62   : > { %1482 = vperm.xlu0 %2939, %v341_v63  }
  0x66   : > { %1492 = vperm.xlu0 %2939, %v343_v0  }
  0x91   : > { %v3256_v9 = vpop.permute.xlu0 %440 }
  0xee   : > { %v692_v10 = vpop.f32.mrb[0].mxu0  ;;  %v733_v11 = vpop.f32.mrb[0].mxu1 }
  0xef   : > { %v693_v12 = vadd.f32 %v692_v10, %v3256_v9  ;;  %v734_v13 = vadd.f32 %v733_v11, %v3256_v9  ;;  %v694_v14 = vpop.f32.mrb[1].mxu0  ;;  %v735_v15 = vpop.f32.mrb[1].mxu1 }
  0xf0   : > { %v695_v17 = vadd.f32 %v694_v14, %v3256_v9  ;;  %v736_v18 = vadd.f32 %v735_v15, %v3256_v9  ;;  %v696_v19 = vpop.f32.mrb[2].mxu0  ;;  %v737_v20 = vpop.f32.mrb[2].mxu1  ;;  %v332_v14 = vld [vmem:[%s4648_s4 + $0xa0] sm:$0xff] }
  0xf1   : > { %v1273_v21 = vmax.f32 %v693_v12, 0.0  ;;  %v1275_v22 = vmax.f32 %v734_v13, 0.0  ;;  %v697_v23 = vpop.f32.mrb[3].mxu0  ;;  %v738_v24 = vpop.f32.mrb[3].mxu1  ;;  %1437 = vperm.xlu1 %2940, %v332_v14  }
  0xf2   : > { %v1274_v25 = vmax.f32 %v695_v17, 0.0  ;;  %v1276_v26 = vmax.f32 %v736_v18, 0.0 }
  0xf3   : > { %v1303_v27 = vmax.f32 %v1273_v21, %v1275_v22 }
  0xf4   : > { %v1304_v28 = vmax.f32 %v1274_v25, %v1276_v26 }
  0xf6   : > { %v774_v29 = vpop.f32.mrb[4].mxu0  ;;  %v815_v30 = vpop.f32.mrb[4].mxu1 }
  0xf7   : > { %v775_v31 = vadd.f32 %v774_v29, %v3256_v9  ;;  %v776_v32 = vpop.f32.mrb[5].mxu0  ;;  %v817_v33 = vpop.f32.mrb[5].mxu1  ;;  %v816_v44 = vadd.f32 %v815_v30, %v3256_v9 }
  0xf8   : > { %v777_v35 = vadd.f32 %v776_v32, %v3256_v9  ;;  %v778_v36 = vpop.f32.mrb[6].mxu0  ;;  %v819_v37 = vpop.f32.mrb[6].mxu1  ;;  %v818_v45 = vadd.f32 %v817_v33, %v3256_v9  ;;  %v334_v33 = vld [vmem:[%s4648_s4 + $0xb0] sm:$0xff] }
  0xf9   : > { %v1277_v38 = vmax.f32 %v775_v31, 0.0  ;;  %v779_v39 = vpop.f32.mrb[7].mxu0  ;;  %v820_v40 = vpop.f32.mrb[7].mxu1  ;;  %v1279_v57 = vmax.f32 %v816_v44, 0.0  ;;  %1447 = vperm.xlu1 %2940, %v334_v33  }
  0xfa   : > { %v1278_v41 = vmax.f32 %v777_v35, 0.0  ;;  %v1280_v62 = vmax.f32 %v818_v45, 0.0 }
  0xfb   : > { %v1305_v42 = vmax.f32 %v1303_v27, %v1277_v38 }
  0xfc   : > { %v1306_v43 = vmax.f32 %v1304_v28, %v1278_v41 }
  0xfe   : > { %v856_v46 = vpop.f32.mrb[8].mxu0  ;;  %v897_v47 = vpop.f32.mrb[8].mxu1 }
  0xff   : > { %v857_v48 = vadd.f32 %v856_v46, %v3256_v9  ;;  %v898_v49 = vadd.f32 %v897_v47, %v3256_v9  ;;  %v858_v50 = vpop.f32.mrb[9].mxu0  ;;  %v899_v51 = vpop.f32.mrb[9].mxu1 }
 0x100   : > { %v859_v53 = vadd.f32 %v858_v50, %v3256_v9  ;;  %v900_v54 = vadd.f32 %v899_v51, %v3256_v9  ;;  %v860_v55 = vpop.f32.mrb[10].mxu0  ;;  %v901_v56 = vpop.f32.mrb[10].mxu1 }
 0x101   : > { %v1281_v58 = vmax.f32 %v857_v48, 0.0  ;;  %v1283_v59 = vmax.f32 %v898_v49, 0.0  ;;  %v861_v60 = vpop.f32.mrb[11].mxu0  ;;  %v902_v61 = vpop.f32.mrb[11].mxu1  ;;  %v336_v56 = vld [vmem:[%s4648_s4 + $0xc0] sm:$0xff] }
 0x102   : > { %v1282_v63 = vmax.f32 %v859_v53, 0.0  ;;  %v1284_v0 = vmax.f32 %v900_v54, 0.0  ;;  %v3324_v61 = vld [vmem:[%s4647_s3] sm:$0xff]   ;;  %1457 = vperm.xlu1 %2940, %v336_v56   ;;  %v3396_v56 = vld [vmem:[%s4647_s3 + $0x50] sm:$0xff]  }
 0x103   : > { %v1307_v2 = vmax.f32 %v1279_v57, %v1281_v58 }
 0x104   : > { %v1308_v3 = vmax.f32 %v1280_v62, %v1282_v63  ;;  %v3329_v62 = vld [vmem:[%s4647_s3 + $0x38] sm:$0xff]  }
 0x105   : > { %v3279_v4 = vmax.f32 %v1307_v2, %v1283_v59 }
 0x106   : > { %v3281_v5 = vmax.f32 %v1308_v3, %v1284_v0  ;;  %v938_v6 = vpop.f32.mrb[12].mxu0  ;;  %v979_v7 = vpop.f32.mrb[12].mxu1 }
 0x107   : > { %v1323_v8 = vpack.c.bf16 %v3279_v4, %v1305_v42  ;;  %v939_v10 = vadd.f32 %v938_v6, %v3256_v9  ;;  %v980_v11 = vadd.f32 %v979_v7, %v3256_v9  ;;  %v940_v12 = vpop.f32.mrb[13].mxu0  ;;  %v981_v13 = vpop.f32.mrb[13].mxu1 }
 0x108   : > { %v941_v15 = vadd.f32 %v940_v12, %v3256_v9  ;;  %v982_v16 = vadd.f32 %v981_v13, %v3256_v9  ;;  %v942_v17 = vpop.f32.mrb[14].mxu0  ;;  %v983_v18 = vpop.f32.mrb[14].mxu1  ;;  %v1324_v19 = vpack.c.bf16 %v3281_v5, %v1306_v43 }
 0x109   : > { %v1285_v20 = vmax.f32 %v939_v10, 0.0  ;;  %v1287_v21 = vmax.f32 %v980_v11, 0.0  ;;  %v943_v22 = vpop.f32.mrb[15].mxu0  ;;  %v984_v23 = vpop.f32.mrb[15].mxu1 }
 0x10a   : > { %v1286_v24 = vmax.f32 %v941_v15, 0.0  ;;  %v1288_v25 = vmax.f32 %v982_v16, 0.0  ;;  %1643 = vmatprep.subr.bf16.mxu0 %v1324_v19  ;;  %2925 = vmatprep.subr.bf16.mxu1 %v1324_v19 }
 0x10b   : > { %v1311_v26 = vmax.f32 %v1285_v20, %v1287_v21  ;;  %1644 = vmatpush1.bf16.msra.mxu0 %v1323_v8  ;;  %2927 = vmatpush1.bf16.msra.mxu1 %v1323_v8  ;;  %v338_v21 = vld [vmem:[%s4648_s4 + $0xd0] sm:$0xff] }
 0x10c   : > { %v1312_v27 = vmax.f32 %v1286_v24, %v1288_v25  ;;  %1467 = vperm.xlu1 %2940, %v338_v21  }
 0x10e   : > { %v1020_v28 = vpop.f32.mrb[16].mxu0  ;;  %v1061_v29 = vpop.f32.mrb[16].mxu1 }
 0x10f   : > { %v1021_v30 = vadd.f32 %v1020_v28, %v3256_v9  ;;  %v1022_v31 = vpop.f32.mrb[17].mxu0  ;;  %v1063_v32 = vpop.f32.mrb[17].mxu1  ;;  %v1062_v43 = vadd.f32 %v1061_v29, %v3256_v9  ;;  %v3354_v28 = vld [vmem:[%s4647_s3 + $0x40] sm:$0xff]  }
 0x110   : > { %v1023_v34 = vadd.f32 %v1022_v31, %v3256_v9  ;;  %v1024_v35 = vpop.f32.mrb[18].mxu0  ;;  %v1065_v36 = vpop.f32.mrb[18].mxu1  ;;  %v1064_v46 = vadd.f32 %v1063_v32, %v3256_v9 }
 0x111   : > { %v1289_v37 = vmax.f32 %v1021_v30, 0.0  ;;  %v1025_v38 = vpop.f32.mrb[19].mxu0  ;;  %v1066_v39 = vpop.f32.mrb[19].mxu1  ;;  %v1291_v63 = vmax.f32 %v1062_v43, 0.0 }
 0x112   : > { %v1290_v40 = vmax.f32 %v1023_v34, 0.0 }
 0x113   : > { %v3297_v41 = vmax.f32 %v1311_v26, %v1289_v37 }
 0x114   : > { %v3299_v42 = vmax.f32 %v1312_v27, %v1290_v40  ;;  %v3349_v27 = vld [vmem:[%s4647_s3 + $0x8] sm:$0xff]  }
 0x115   : > { %v1329_v44 = vpack.c.bf16 %v3297_v41, %v3297_v41  ;;  %v1325_v45 = vpack.c.bf16 %v3297_v41, %v3279_v4  ;;  %v1292_v4 = vmax.f32 %v1064_v46, 0.0 }
 0x116   : > { %v1102_v47 = vpop.f32.mrb[20].mxu0  ;;  %v1143_v48 = vpop.f32.mrb[20].mxu1  ;;  %v1330_v49 = vpack.c.bf16 %v3299_v42, %v3299_v42  ;;  %v1326_v50 = vpack.c.bf16 %v3299_v42, %v3281_v5 }
 0x117   : > { %v1103_v51 = vadd.f32 %v1102_v47, %v3256_v9  ;;  %v1144_v52 = vadd.f32 %v1143_v48, %v3256_v9  ;;  %v1104_v53 = vpop.f32.mrb[21].mxu0  ;;  %v1145_v54 = vpop.f32.mrb[21].mxu1  ;;  %v1626_v55 = vsel %vm1624_vm2, %v1329_v44, 0  ;;  %v3372_v44 = vld [vmem:[%s4647_s3 + $0x10] sm:$0xff]  }
 0x118   : > { %v1105_v57 = vadd.f32 %v1104_v53, %v3256_v9  ;;  %v1146_v58 = vadd.f32 %v1145_v54, %v3256_v9  ;;  %v1106_v59 = vpop.f32.mrb[22].mxu0  ;;  %v1147_v60 = vpop.f32.mrb[22].mxu1  ;;  %2872 = vmatprep.subr.msk.bf16.mxu0 %vm1624_vm2, %v1330_v49  ;;  %2926 = vmatprep.subr.msk.bf16.mxu1 %vm1624_vm2, %v1330_v49  ;;  %v342_v54 = vld [vmem:[%s4648_s4 + $0xf0] sm:$0xff] }
 0x119   : > { %v1293_v0 = vmax.f32 %v1103_v51, 0.0  ;;  %v1107_v2 = vpop.f32.mrb[23].mxu0  ;;  %v1148_v3 = vpop.f32.mrb[23].mxu1  ;;  %1646 = vmatpush1.bf16.msra.mxu0 %v1626_v55  ;;  %2928 = vmatpush1.bf16.msra.mxu1 %v1626_v55  ;;  %v1295_v7 = vmax.f32 %v1144_v52, 0.0  ;;  %v2992_v55 = vld [vmem:[%s4647_s3 + $0x18] sm:$0xff]   ;;  %v2996_v59 = vld [vmem:[%s4647_s3 + $0x28] sm:$0xff]  }
 0x11a   : > { %v1294_v5 = vmax.f32 %v1105_v57, 0.0  ;;  %1836 = vmatprep.subr.bf16.mxu0 %v1326_v50  ;;  %v1296_v10 = vmax.f32 %v1146_v58, 0.0  ;;  %v2994_v57 = vld [vmem:[%s4647_s3 + $0x20] sm:$0xff]   ;;  %v3409_v58 = vld [vmem:[%s4647_s3 + $0x58] sm:$0xff]   ;;  %v3445_v2 = vld [vmem:[%s4647_s3 + $0x70] sm:$0xff]  }
 0x11b   : > { %v1315_v6 = vmax.f32 %v1291_v63, %v1293_v0  ;;  %v3422_v60 = vld [vmem:[%s4647_s3 + $0x60] sm:$0xff]   ;;  %v2998_v63 = vld [vmem:[%s4647_s3 + $0x30] sm:$0xff]   ;;  %v3435_v0 = vld [vmem:[%s4647_s3 + $0x68] sm:$0xff]  }
 0x11c   : > { %v1316_v8 = vmax.f32 %v1292_v4, %v1294_v5  ;;  %2873 = vmatmul.mubr.msk.bf16.vlgmr.msra.gmra.mrb[32].mxu0 %vm1575_vm3, %v3324_v61  ;;  %2880 = vmatmul.mubr.msk.bf16.vlgmr.msra.gmra.mrb[28].mxu1 %vm1575_vm3, %v3329_v62  ;;  %v3456_v3 = vld [vmem:[%s4647_s3 + $0x78] sm:$0xff]  }
 0x11d   : > { %v1317_v11 = vmax.f32 %v1315_v6, %v1295_v7  ;;  %1837 = vmatpush1.bf16.msra.mxu0 %v1325_v45  ;;  %1685 = vmatprep.mubr.bf16.mxu0 %v3010_v1  ;;  %v3377_v45 = vld [vmem:[%s4647_s3 + $0x48] sm:$0xff]  }
 0x11e   : > { %v1318_v12 = vmax.f32 %v1316_v8, %v1296_v10  ;;  %v1184_v13 = vpop.f32.mrb[24].mxu0  ;;  %v1225_v14 = vpop.f32.mrb[24].mxu1  ;;  %1755 = vmatprep.mubr.bf16.mxu1 %v3010_v1 }
 0x11f   : > { %v1327_v15 = vpack.c.bf16 %v1317_v11, %v3297_v41  ;;  %v1331_v16 = vpack.c.bf16 %v1317_v11, %v1317_v11  ;;  %v1185_v17 = vadd.f32 %v1184_v13, %v3256_v9  ;;  %v1226_v18 = vadd.f32 %v1225_v14, %v3256_v9  ;;  %v1186_v19 = vpop.f32.mrb[25].mxu0  ;;  %v1227_v20 = vpop.f32.mrb[25].mxu1 }
 0x120   : > { %v1332_v22 = vpack.c.bf16 %v1318_v12, %v1318_v12  ;;  %v1187_v23 = vadd.f32 %v1186_v19, %v3256_v9  ;;  %v1228_v24 = vadd.f32 %v1227_v20, %v3256_v9  ;;  %v1328_v25 = vpack.c.bf16 %v1318_v12, %v3299_v42  ;;  %v1188_v26 = vpop.f32.mrb[26].mxu0  ;;  %v1229_v29 = vpop.f32.mrb[26].mxu1  ;;  %v340_v42 = vld [vmem:[%s4648_s4 + $0xe0] sm:$0xff] }
 0x121   : > { %v1297_v30 = vmax.f32 %v1185_v17, 0.0  ;;  %v1299_v31 = vmax.f32 %v1226_v18, 0.0  ;;  %v1632_v32 = vsel %vm1624_vm2, %v1331_v16, 0  ;;  %v1189_v33 = vpop.f32.mrb[27].mxu0  ;;  %v1230_v34 = vpop.f32.mrb[27].mxu1  ;;  %1477 = vperm.xlu1 %2940, %v340_v42  }
 0x122   : > { %v1298_v35 = vmax.f32 %v1187_v23, 0.0  ;;  %v1300_v36 = vmax.f32 %v1228_v24, 0.0  ;;  %2889 = vmatprep.subr.msk.bf16.mxu0 %vm1624_vm2, %v1332_v22  ;;  %2029 = vmatprep.subr.bf16.mxu1 %v1328_v25 }
 0x123   : > { %v1319_v37 = vmax.f32 %v1297_v30, %v1299_v31  ;;  %1839 = vmatpush1.bf16.msra.mxu0 %v1632_v32  ;;  %2030 = vmatpush1.bf16.msra.mxu1 %v1327_v15 }
 0x124   : > { %v1320_v38 = vmax.f32 %v1298_v35, %v1300_v36  ;;  %2874 = vmatmul.mubr.msk.bf16.gmra.mrb[36].mxu0 %vm1575_vm3, %v3349_v27  ;;  %2881 = vmatmul.mubr.msk.bf16.gmra.mrb[32].mxu1 %vm1575_vm3, %v3354_v28 }
 0x125   : > { %1695 = vmatprep.mubr.bf16.mxu0 %v3010_v1  ;;  %1765 = vmatprep.mubr.bf16.mxu1 %v3010_v1 }
 0x126   : > { %v1266_v39 = vpop.f32.mrb[28].mxu0  ;;  %1487 = vperm.xlu1 %2940, %v342_v54  }
 0x127   : > { %v1267_v40 = vadd.f32 %v1266_v39, %v3256_v9  ;;  %v1268_v41 = vpop.f32.mrb[29].mxu0 }
 0x128   : > { %v1269_v43 = vadd.f32 %v1268_v41, %v3256_v9  ;;  %v1270_v46 = vpop.f32.mrb[30].mxu0 }
 0x129   : > { %v1301_v47 = vmax.f32 %v1267_v40, 0.0  ;;  %v1271_v48 = vpop.f32.mrb[31].mxu0 }
 0x12a   : > { %v1302_v49 = vmax.f32 %v1269_v43, 0.0 }
 0x12b   : > { %v1321_v50 = vmax.f32 %v1319_v37, %v1301_v47 }
 0x12c   : > { %v1322_v51 = vmax.f32 %v1320_v38, %v1302_v49  ;;  %2875 = vmatmul.mubr.msk.bf16.gmra.mrb[40].mxu0 %vm1575_vm3, %v3372_v44  ;;  %2882 = vmatmul.mubr.msk.bf16.gmra.mrb[36].mxu1 %vm1575_vm3, %v3377_v45 }
 0x12d   : > { %v1333_v9 = vpack.c.bf16 %v1321_v50, %v1321_v50  ;;  %1705 = vmatprep.mubr.bf16.mxu0 %v3010_v1  ;;  %1775 = vmatprep.mubr.bf16.mxu1 %v3010_v1 }
 0x12e   : > { %v1334_v52 = vpack.c.bf16 %v1322_v51, %v1322_v51 }
 0x12f   : > { %v1638_v53 = vsel %vm1624_vm2, %v1333_v9, 0 }
 0x130   : > { %2906 = vmatprep.subr.msk.bf16.mxu1 %vm1624_vm2, %v1334_v52 }
 0x131   : > { %2032 = vmatpush1.bf16.msra.mxu1 %v1638_v53 }
 0x134   : > { %2876 = vmatmul.mubr.msk.bf16.gmra.mrb[44].mxu0 %vm1575_vm3, %v2992_v55  ;;  %2883 = vmatmul.mubr.msk.bf16.gmra.mrb[40].mxu1 %vm1575_vm3, %v3396_v56 }
 0x135   : > { %1715 = vmatprep.mubr.bf16.mxu0 %v3010_v1  ;;  %1785 = vmatprep.mubr.bf16.mxu1 %v3010_v1 }
 0x13c   : > { %2877 = vmatmul.mubr.msk.bf16.gmra.mrb[48].mxu0 %vm1575_vm3, %v2994_v57  ;;  %2884 = vmatmul.mubr.msk.bf16.gmra.mrb[44].mxu1 %vm1575_vm3, %v3409_v58 }
 0x13d   : > { %1725 = vmatprep.mubr.bf16.mxu0 %v3010_v1  ;;  %1795 = vmatprep.mubr.bf16.mxu1 %v3010_v1 }
 0x144   : > { %2878 = vmatmul.mubr.msk.bf16.gmra.mrb[52].mxu0 %vm1575_vm3, %v2996_v59  ;;  %2885 = vmatmul.mubr.msk.bf16.gmra.mrb[48].mxu1 %vm1575_vm3, %v3422_v60 }
 0x145   : > { %1735 = vmatprep.mubr.bf16.mxu0 %v3010_v1  ;;  %1805 = vmatprep.mubr.bf16.mxu1 %v3010_v1 }
 0x14c   : > { %2879 = vmatmul.mubr.msk.bf16.gmra.mrb[56].mxu0 %vm1575_vm3, %v2998_v63  ;;  %2886 = vmatmul.mubr.msk.bf16.gmra.mrb[52].mxu1 %vm1575_vm3, %v3435_v0 }
 0x14d   : > { %1815 = vmatprep.mubr.bf16.mxu1 %v3010_v1  ;;  %1868 = vmatprep.mubr.bf16.mxu0 %v3010_v1 }
 0x154   : > { %2887 = vmatmul.mubr.msk.bf16.gmra.mrb[56].mxu1 %vm1575_vm3, %v3445_v2  ;;  %2890 = vmatmul.mubr.msk.bf16.vlgmr.msra.gmra.mrb[60].mxu0 %vm1575_vm3, %v3324_v61 }
 0x155   : > { %1825 = vmatprep.mubr.bf16.mxu1 %v3010_v1  ;;  %1878 = vmatprep.mubr.bf16.mxu0 %v3010_v1 }
 0x15c   : > { %2888 = vmatmul.mubr.msk.bf16.gmra.mrb[60].mxu1 %vm1575_vm3, %v3456_v3  ;;  %2891 = vmatmul.mubr.msk.bf16.gmra.mrb[64].mxu0 %vm1575_vm3, %v3349_v27 }
 0x15d   : > { %1888 = vmatprep.mubr.bf16.mxu0 %v3010_v1  ;;  %2061 = vmatprep.mubr.bf16.mxu1 %v3010_v1 }
 0x164   : > { %2892 = vmatmul.mubr.msk.bf16.gmra.mrb[68].mxu0 %vm1575_vm3, %v3372_v44  ;;  %2907 = vmatmul.mubr.msk.bf16.vlgmr.msra.gmra.mrb[64].mxu1 %vm1575_vm3, %v3324_v61  ;;  %v3542_v61 = vpop.permute.xlu0 %1337 }
 0x165   : > { %1898 = vmatprep.mubr.bf16.mxu0 %v3010_v1  ;;  %2071 = vmatprep.mubr.bf16.mxu1 %v3010_v1 }
 0x168   : > { %v3546_v4 = vpop.permute.xlu0 %1352 }
 0x16c   : > { %2893 = vmatmul.mubr.msk.bf16.gmra.mrb[72].mxu0 %vm1575_vm3, %v2992_v55  ;;  %2908 = vmatmul.mubr.msk.bf16.gmra.mrb[68].mxu1 %vm1575_vm3, %v3349_v27  ;;  %v3552_v6 = vpop.permute.xlu0 %1362 }
 0x16d   : > { %1908 = vmatprep.mubr.bf16.mxu0 %v3010_v1  ;;  %2081 = vmatprep.mubr.bf16.mxu1 %v3010_v1 }
 0x170   : > { %v3556_v8 = vpop.permute.xlu0 %1372 }
 0x174   : > { %2894 = vmatmul.mubr.msk.bf16.gmra.mrb[76].mxu0 %vm1575_vm3, %v2994_v57  ;;  %2909 = vmatmul.mubr.msk.bf16.gmra.mrb[72].mxu1 %vm1575_vm3, %v3372_v44 }
 0x175   : > { %1918 = vmatprep.mubr.bf16.mxu0 %v3010_v1  ;;  %2091 = vmatprep.mubr.bf16.mxu1 %v3010_v1 }
 0x17c   : > { %2895 = vmatmul.mubr.msk.bf16.gmra.mrb[80].mxu0 %vm1575_vm3, %v2996_v59  ;;  %2910 = vmatmul.mubr.msk.bf16.gmra.mrb[76].mxu1 %vm1575_vm3, %v2992_v55 }
 0x17d   : > { %1928 = vmatprep.mubr.bf16.mxu0 %v3010_v1  ;;  %2101 = vmatprep.mubr.bf16.mxu1 %v3010_v1 }
 0x184   : > { %2896 = vmatmul.mubr.msk.bf16.gmra.mrb[84].mxu0 %vm1575_vm3, %v2998_v63  ;;  %2911 = vmatmul.mubr.msk.bf16.gmra.mrb[80].mxu1 %vm1575_vm3, %v2994_v57 }
 0x185   : > { %1938 = vmatprep.mubr.bf16.mxu0 %v3010_v1  ;;  %2111 = vmatprep.mubr.bf16.mxu1 %v3010_v1 }
 0x18c   : > { %2897 = vmatmul.mubr.msk.bf16.gmra.mrb[88].mxu0 %vm1575_vm3, %v3329_v62  ;;  %2912 = vmatmul.mubr.msk.bf16.gmra.mrb[84].mxu1 %vm1575_vm3, %v2996_v59 }
 0x18d   : > { %1948 = vmatprep.mubr.bf16.mxu0 %v3010_v1  ;;  %2121 = vmatprep.mubr.bf16.mxu1 %v3010_v1 }
 0x194   : > { %2898 = vmatmul.mubr.msk.bf16.gmra.mrb[92].mxu0 %vm1575_vm3, %v3354_v28  ;;  %2913 = vmatmul.mubr.msk.bf16.gmra.mrb[88].mxu1 %vm1575_vm3, %v2998_v63 }
 0x195   : > { %1958 = vmatprep.mubr.bf16.mxu0 %v3010_v1  ;;  %2131 = vmatprep.mubr.bf16.mxu1 %v3010_v1 }
 0x19c   : > { %2899 = vmatmul.mubr.msk.bf16.gmra.mrb[96].mxu0 %vm1575_vm3, %v3377_v45  ;;  %2914 = vmatmul.mubr.msk.bf16.gmra.mrb[92].mxu1 %vm1575_vm3, %v3329_v62  ;;  %v3544_v62 = vpop.permute.xlu1 %1342 }
 0x19d   : > { %1968 = vmatprep.mubr.bf16.mxu0 %v3010_v1  ;;  %2141 = vmatprep.mubr.bf16.mxu1 %v3010_v1 }
 0x1a0   : > { %v3550_v5 = vpop.permute.xlu1 %1347 }
 0x1a4   : > { %2900 = vmatmul.mubr.msk.bf16.gmra.mrb[100].mxu0 %vm1575_vm3, %v3396_v56  ;;  %2915 = vmatmul.mubr.msk.bf16.gmra.mrb[96].mxu1 %vm1575_vm3, %v3354_v28  ;;  %v3554_v7 = vpop.permute.xlu1 %1357 }
 0x1a5   : > { %1978 = vmatprep.mubr.bf16.mxu0 %v3010_v1  ;;  %2151 = vmatprep.mubr.bf16.mxu1 %v3010_v1 }
 0x1a8   : > { %v3558_v10 = vpop.permute.xlu1 %1367 }
 0x1ac   : > { %2901 = vmatmul.mubr.msk.bf16.gmra.mrb[104].mxu0 %vm1575_vm3, %v3409_v58  ;;  %2916 = vmatmul.mubr.msk.bf16.gmra.mrb[100].mxu1 %vm1575_vm3, %v3377_v45  ;;  %v3562_v11 = vpop.permute.xlu1 %1377 }
 0x1ad   : > { %1988 = vmatprep.mubr.bf16.mxu0 %v3010_v1  ;;  %2161 = vmatprep.mubr.bf16.mxu1 %v3010_v1 }
 0x1b0   : > { %v3566_v21 = vpop.permute.xlu1 %1387 }
 0x1b1   : > { %4709 = vst [vmem:[#allocation4_spill] sm:$0xff] %v3566_v21 }
 0x1b4   : > { %2902 = vmatmul.mubr.msk.bf16.gmra.mrb[108].mxu0 %vm1575_vm3, %v3422_v60  ;;  %2917 = vmatmul.mubr.msk.bf16.gmra.mrb[104].mxu1 %vm1575_vm3, %v3396_v56  ;;  %v3574_v31 = vpop.permute.xlu1 %1397 }
 0x1b5   : > { %1998 = vmatprep.mubr.bf16.mxu0 %v3010_v1  ;;  %2171 = vmatprep.mubr.bf16.mxu1 %v3010_v1  ;;  %4711 = vst [vmem:[#allocation6_spill] sm:$0xff] %v3574_v31 }
 0x1b8   : > { %v3594_v41 = vpop.permute.xlu1 %1407 }
 0x1b9   : > { %4713 = vst [vmem:[#allocation8_spill] sm:$0xff] %v3594_v41 }
 0x1bc   : > { %2903 = vmatmul.mubr.msk.bf16.gmra.mrb[112].mxu0 %vm1575_vm3, %v3435_v0  ;;  %2918 = vmatmul.mubr.msk.bf16.gmra.mrb[108].mxu1 %vm1575_vm3, %v3409_v58  ;;  %v3614_v51 = vpop.permute.xlu1 %1417 }
 0x1bd   : > { %2008 = vmatprep.mubr.bf16.mxu0 %v3010_v1  ;;  %2181 = vmatprep.mubr.bf16.mxu1 %v3010_v1  ;;  %4715 = vst [vmem:[#allocation10_spill] sm:$0xff] %v3614_v51 }
 0x1c4   : > { %2904 = vmatmul.mubr.msk.bf16.gmra.mrb[116].mxu0 %vm1575_vm3, %v3445_v2  ;;  %2919 = vmatmul.mubr.msk.bf16.gmra.mrb[112].mxu1 %vm1575_vm3, %v3422_v60  ;;  %v3634_v60 = vpop.permute.xlu1 %1427 }
 0x1c5   : > { %2018 = vmatprep.mubr.bf16.mxu0 %v3010_v1  ;;  %2191 = vmatprep.mubr.bf16.mxu1 %v3010_v1  ;;  %4718 = vst [vmem:[#allocation13_spill] sm:$0xff] %v3634_v60 }
 0x1cc   : > { %2905 = vmatmul.mubr.msk.bf16.gmra.mrb[120].mxu0 %vm1575_vm3, %v3456_v3  ;;  %2920 = vmatmul.mubr.msk.bf16.gmra.mrb[116].mxu1 %vm1575_vm3, %v3435_v0 }
 0x1cd   : > { %2201 = vmatprep.mubr.bf16.mxu1 %v3010_v1 }
 0x1d4   : > { %2921 = vmatmul.mubr.msk.bf16.gmra.mrb[120].mxu1 %vm1575_vm3, %v3445_v2 }
 0x1d5   : > { %2211 = vmatprep.mubr.bf16.mxu1 %v3010_v1  ;;  %v3560_v1 = vpop.permute.xlu0 %1382 }
 0x1d9   : > { %v3564_v20 = vpop.permute.xlu0 %1392 }
 0x1da   : > { %4708 = vst [vmem:[#allocation3_spill] sm:$0xff] %v3564_v20 }
 0x1dc   : > { %2922 = vmatmul.mubr.msk.bf16.gmra.mrb[124].mxu1 %vm1575_vm3, %v3456_v3 }
 0x1dd   : > { %v3572_v30 = vpop.permute.xlu0 %1402 }
 0x1de   : > { %4710 = vst [vmem:[#allocation5_spill] sm:$0xff] %v3572_v30 }
 0x1e1   : > { %v3592_v40 = vpop.permute.xlu0 %1412 }
 0x1e2   : > { %4712 = vst [vmem:[#allocation7_spill] sm:$0xff] %v3592_v40 }
 0x1e5   : > { %v3612_v50 = vpop.permute.xlu0 %1422 }
 0x1e6   : > { %4714 = vst [vmem:[#allocation9_spill] sm:$0xff] %v3612_v50 }
 0x1e9   : > { %v3632_v59 = vpop.permute.xlu0 %1432 }
 0x1ea   : > { %4717 = vst [vmem:[#allocation12_spill] sm:$0xff] %v3632_v59 }
 0x1ef   : > { %v1677_v12 = vpop.f32.mrb[32].mxu0  ;;  %v1747_v13 = vpop.f32.mrb[28].mxu1 }
 0x1f0   : > { %v1679_v14 = vpop.f32.mrb[33].mxu0  ;;  %v1749_v15 = vpop.f32.mrb[29].mxu1  ;;  %v3641_v2 = vadd.f32 %v1677_v12, %v3542_v61 }
 0x1f1   : > { %v1751_v16 = vpop.f32.mrb[30].mxu1  ;;  %v1681_v17 = vpop.f32.mrb[34].mxu0  ;;  %v3648_v31 = vadd.f32 %v1679_v14, %v3542_v61 }
 0x1f2   : > { %v1753_v18 = vpop.f32.mrb[31].mxu1  ;;  %v1683_v19 = vpop.f32.mrb[35].mxu0 }
 0x1f3   : > { %v3661_v12 = vadd.f32 %v1753_v18, %v3592_v40 }
 0x1f5   : > { %4726 = vst [vmem:[#allocation21_spill] sm:$0xff] %v3661_v12 }
 0x1f7   : > { %v1687_v22 = vpop.f32.mrb[36].mxu0  ;;  %v1757_v23 = vpop.f32.mrb[32].mxu1 }
 0x1f8   : > { %v1689_v24 = vpop.f32.mrb[37].mxu0  ;;  %v1759_v25 = vpop.f32.mrb[33].mxu1  ;;  %v3683_v18 = vadd.f32 %v1757_v23, %v3614_v51 }
 0x1f9   : > { %v1691_v26 = vpop.f32.mrb[38].mxu0  ;;  %v1761_v27 = vpop.f32.mrb[34].mxu1 }
 0x1fa   : > { %v3568_v28 = vpop.f32.mrb[39].mxu0  ;;  %v3570_v29 = vpop.f32.mrb[35].mxu1  ;;  %4730 = vst [vmem:[#allocation25_spill] sm:$0xff] %v3683_v18 }
 0x1ff   : > { %v3576_v32 = vpop.f32.mrb[40].mxu0  ;;  %v3578_v33 = vpop.f32.mrb[36].mxu1 }
 0x200   : > { %v3580_v34 = vpop.f32.mrb[41].mxu0  ;;  %v3582_v35 = vpop.f32.mrb[37].mxu1 }
 0x201   : > { %v3584_v36 = vpop.f32.mrb[42].mxu0  ;;  %v3586_v37 = vpop.f32.mrb[38].mxu1 }
 0x202   : > { %v3588_v38 = vpop.f32.mrb[43].mxu0  ;;  %v3590_v39 = vpop.f32.mrb[39].mxu1  ;;  %v3746_v12 = vadd.f32 %v3584_v36, %v3552_v6 }
 0x203   : > { %v3766_v36 = vadd.f32 %v3590_v39, %v3632_v59 }
 0x205   : > { %4739 = vst [vmem:[#allocation34_spill] sm:$0xff] %v3766_v36 }
 0x207   : > { %v3596_v42 = vpop.f32.mrb[44].mxu0  ;;  %v3598_v43 = vpop.f32.mrb[40].mxu1 }
 0x208   : > { %v3600_v44 = vpop.f32.mrb[45].mxu0  ;;  %v3602_v45 = vpop.f32.mrb[41].mxu1 }
 0x209   : > { %v3604_v46 = vpop.f32.mrb[46].mxu0  ;;  %v3606_v47 = vpop.f32.mrb[42].mxu1 }
 0x20a   : > { %v3608_v48 = vpop.f32.mrb[47].mxu0  ;;  %v3610_v49 = vpop.f32.mrb[43].mxu1 }
 0x20f   : > { %v3616_v9 = vpop.f32.mrb[48].mxu0  ;;  %v3618_v52 = vpop.f32.mrb[44].mxu1 }
 0x210   : > { %v3620_v53 = vpop.f32.mrb[49].mxu0  ;;  %v3622_v54 = vpop.f32.mrb[45].mxu1 }
 0x211   : > { %v3624_v55 = vpop.f32.mrb[50].mxu0  ;;  %v3626_v56 = vpop.f32.mrb[46].mxu1 }
 0x212   : > { %v3628_v57 = vpop.f32.mrb[51].mxu0  ;;  %v3630_v58 = vpop.f32.mrb[47].mxu1 }
 0x213   : > { %4716 = vst [vmem:[#allocation11_spill] sm:$0xff] %v3630_v58  ;;  %v3655_v58 = vadd.f32 %v1747_v13, %v3594_v41  ;;  %v3677_v13 = vadd.f32 %v1687_v22, %v3550_v5 }
 0x215   : > { %4724 = vst [vmem:[#allocation19_spill] sm:$0xff] %v3655_v58  ;;  %v4779_v58 = vld [vmem:[#allocation6_spill] sm:$0xff] }
 0x217   : > { %v3636_v63 = vpop.f32.mrb[52].mxu0  ;;  %v3638_v0 = vpop.f32.mrb[48].mxu1 }
 0x218   : > { %4719 = vst [vmem:[#allocation14_spill] sm:$0xff] %v3636_v63  ;;  %4720 = vst [vmem:[#allocation15_spill] sm:$0xff] %v3638_v0  ;;  %v3643_v3 = vpop.f32.mrb[53].mxu0  ;;  %v3645_v30 = vpop.f32.mrb[49].mxu1  ;;  %v3658_v63 = vadd.f32 %v1751_v16, %v3592_v40  ;;  %v3664_v0 = vadd.f32 %v1681_v17, %v3544_v62  ;;  %v3680_v16 = vadd.f32 %v1689_v24, %v3550_v5 }
 0x219   : > { %4721 = vst [vmem:[#allocation16_spill] sm:$0xff] %v3645_v30  ;;  %v3650_v20 = vpop.f32.mrb[54].mxu0  ;;  %v3652_v21 = vpop.f32.mrb[50].mxu1  ;;  %v3687_v40 = vadd.f32 %v1759_v25, %v3614_v51  ;;  %v3719_v17 = vadd.f32 %v3570_v29, %v3612_v50 }
 0x21a   : > { %4722 = vst [vmem:[#allocation17_spill] sm:$0xff] %v3650_v20  ;;  %4723 = vst [vmem:[#allocation18_spill] sm:$0xff] %v3652_v21  ;;  %v3666_v30 = vpop.f32.mrb[55].mxu0  ;;  %v3668_v14 = vpop.f32.mrb[51].mxu1  ;;  %v3671_v20 = vadd.f32 %v1749_v15, %v3594_v41  ;;  %v3674_v21 = vadd.f32 %v1683_v19, %v3544_v62  ;;  %v3691_v41 = vadd.f32 %v1691_v26, %v3546_v4 }
 0x21b   : > { %4725 = vst [vmem:[#allocation20_spill] sm:$0xff] %v3658_v63  ;;  %4727 = vst [vmem:[#allocation22_spill] sm:$0xff] %v3666_v30  ;;  %v3694_v19 = vadd.f32 %v1761_v27, %v3612_v50  ;;  %v3697_v24 = vpop.permute.xlu0 %1442  ;;  %v3702_v25 = vpop.permute.xlu1 %1437  ;;  %v3723_v15 = vadd.f32 %v3576_v32, %v3554_v7  ;;  %v3742_v32 = vadd.f32 %v3578_v33, %v3634_v60 }
 0x21c   : > { %4728 = vst [vmem:[#allocation23_spill] sm:$0xff] %v3668_v14  ;;  %4729 = vst [vmem:[#allocation24_spill] sm:$0xff] %v3671_v20  ;;  %v3715_v14 = vadd.f32 %v3568_v28, %v3546_v4  ;;  %v3734_v28 = vadd.f32 %v3580_v34, %v3554_v7  ;;  %v3750_v26 = vadd.f32 %v3586_v37, %v3632_v59 }
 0x21d   : > { %4731 = vst [vmem:[#allocation26_spill] sm:$0xff] %v3687_v40  ;;  %4732 = vst [vmem:[#allocation27_spill] sm:$0xff] %v3694_v19  ;;  %v3754_v34 = vadd.f32 %v3588_v38, %v3552_v6  ;;  %v3762_v33 = vadd.f32 %v3582_v35, %v3634_v60  ;;  %v3770_v37 = vadd.f32 %v3596_v42, %v3558_v10 }
 0x21e   : > { %4733 = vst [vmem:[#allocation28_spill] sm:$0xff] %v3697_v24  ;;  %4734 = vst [vmem:[#allocation29_spill] sm:$0xff] %v3702_v25  ;;  %v3774_v38 = vadd.f32 %v3600_v44, %v3558_v10  ;;  %v3778_v19 = vadd.f32 %v3598_v43, %v3702_v25  ;;  %v3785_v39 = vadd.f32 %v3602_v45, %v3702_v25 }
 0x21f   : > { %v3708_v30 = vpop.f32.mrb[56].mxu0  ;;  %v3710_v22 = vpop.f32.mrb[52].mxu1  ;;  %4735 = vst [vmem:[#allocation30_spill] sm:$0xff] %v3719_v17  ;;  %4736 = vst [vmem:[#allocation31_spill] sm:$0xff] %v3742_v32  ;;  %v3790_v44 = vadd.f32 %v3604_v46, %v3556_v8  ;;  %v3794_v43 = vadd.f32 %v3606_v47, %v3697_v24  ;;  %v3813_v60 = vadd.f32 %v3608_v48, %v3556_v8 }
 0x220   : > { %v3725_v51 = vpop.f32.mrb[57].mxu0  ;;  %v3727_v27 = vpop.f32.mrb[53].mxu1  ;;  %4737 = vst [vmem:[#allocation32_spill] sm:$0xff] %v3750_v26  ;;  %4738 = vst [vmem:[#allocation33_spill] sm:$0xff] %v3762_v33  ;;  %v3817_v45 = vadd.f32 %v3610_v49, %v3697_v24  ;;  %v3827_v32 = vadd.f32 %v3616_v9, %v3562_v11  ;;  %v3845_v9 = vadd.f32 %v3624_v55, %v3560_v1 }
 0x221   : > { %v3736_v29 = vpop.f32.mrb[58].mxu0  ;;  %v3738_v50 = vpop.f32.mrb[54].mxu1  ;;  %4740 = vst [vmem:[#allocation35_spill] sm:$0xff] %v3778_v19  ;;  %4741 = vst [vmem:[#allocation36_spill] sm:$0xff] %v3785_v39 }
 0x222   : > { %v3756_v18 = vpop.f32.mrb[59].mxu0  ;;  %v3758_v23 = vpop.f32.mrb[55].mxu1  ;;  %4742 = vst [vmem:[#allocation37_spill] sm:$0xff] %v3794_v43  ;;  %4746 = vst [vmem:[#allocation41_spill] sm:$0xff] %v3817_v45 }
 0x223   : > { %v3797_v59 = vpop.permute.xlu0 %1452  ;;  %v3802_v25 = vpop.permute.xlu1 %1447 }
 0x224   : > { %4743 = vst [vmem:[#allocation38_spill] sm:$0xff] %v3797_v59  ;;  %4744 = vst [vmem:[#allocation39_spill] sm:$0xff] %v3802_v25  ;;  %v3841_v36 = vadd.f32 %v3618_v52, %v3802_v25  ;;  %v4753_v52 = vmax.f32 %v3641_v2, 0.0  ;;  %v4757_v2 = vmax.f32 %v3664_v0, 0.0 }
 0x226   : > { %4750 = vst [vmem:[#allocation45_spill] sm:$0xff] %v3841_v36 }
 0x227   : > { %v3808_v63 = vpop.f32.mrb[56].mxu1  ;;  %v1870_v40 = vpop.f32.mrb[60].mxu0 }
 0x228   : > { %4745 = vst [vmem:[#allocation40_spill] sm:$0xff] %v3808_v63  ;;  %v1871_v42 = vadd.f32 %v1870_v40, %v3542_v61  ;;  %v3820_v46 = vpop.f32.mrb[57].mxu1  ;;  %v1872_v17 = vpop.f32.mrb[61].mxu0  ;;  %v3834_v40 = vadd.f32 %v3620_v53, %v3562_v11  ;;  %v3850_v53 = vadd.f32 %v3622_v54, %v3802_v25  ;;  %v4754_v54 = vmax.f32 %v3648_v31, 0.0  ;;  %v4758_v31 = vld [vmem:[#allocation11_spill] sm:$0xff] }
 0x229   : > { %4747 = vst [vmem:[#allocation42_spill] sm:$0xff] %v3820_v46  ;;  %v1873_v48 = vadd.f32 %v1872_v17, %v3542_v61  ;;  %v3830_v19 = vpop.f32.mrb[58].mxu1  ;;  %v1874_v49 = vpop.f32.mrb[62].mxu0 }
 0x22a   : > { %4748 = vst [vmem:[#allocation43_spill] sm:$0xff] %v3830_v19  ;;  %v2224_v24 = vmax.f32 %v1871_v42, 0.0  ;;  %v1875_v47 = vadd.f32 %v1874_v49, %v3544_v62  ;;  %v3837_v39 = vpop.f32.mrb[59].mxu1  ;;  %v1876_v35 = vpop.f32.mrb[63].mxu0  ;;  %4751 = vst [vmem:[#allocation46_spill] sm:$0xff] %v3850_v53  ;;  %v3854_v42 = vadd.f32 %v3626_v56, %v3797_v59  ;;  %v3858_v49 = vadd.f32 %v3628_v57, %v3560_v1 }
 0x22b   : > { %4749 = vst [vmem:[#allocation44_spill] sm:$0xff] %v3837_v39  ;;  %v2225_v17 = vmax.f32 %v1873_v48, 0.0  ;;  %v1877_v43 = vadd.f32 %v1876_v35, %v3544_v62  ;;  %v3870_v56 = vpop.permute.xlu0 %1462  ;;  %v3874_v19 = vpop.permute.xlu1 %1457 }
 0x22c   : > { %4752 = vst [vmem:[#allocation47_spill] sm:$0xff] %v3854_v42  ;;  %v3862_v39 = vmax.f32 %v4753_v52, %v2224_v24  ;;  %v2230_v55 = vmax.f32 %v1875_v47, 0.0  ;;  %4755 = vst [vmem:[#allocation48_spill] sm:$0xff] %v3870_v56  ;;  %v4763_v47 = vld [vmem:[#allocation14_spill] sm:$0xff] }
 0x22d   : > { %v3868_v25 = vmax.f32 %v4754_v54, %v2225_v17  ;;  %v2231_v26 = vmax.f32 %v1877_v43, 0.0  ;;  %4756 = vst [vmem:[#allocation49_spill] sm:$0xff] %v3874_v19  ;;  %v3884_v17 = vadd.f32 %v4758_v31, %v3797_v59  ;;  %v4760_v43 = vmax.f32 %v3674_v21, 0.0 }
 0x22e   : > { %v3878_v24 = vmax.f32 %v4757_v2, %v2230_v55  ;;  %v4762_v2 = vld [vmem:[#allocation4_spill] sm:$0xff]  ;;  %v4766_v55 = vld [vmem:[#allocation15_spill] sm:$0xff] }
 0x22f   : > { %4759 = vst [vmem:[#allocation11_spill] sm:$0xff] %v3884_v17  ;;  %v3888_v54 = vmax.f32 %v4760_v43, %v2231_v26  ;;  %v3890_v35 = vpop.f32.mrb[60].mxu1  ;;  %v1880_v57 = vpop.f32.mrb[64].mxu0  ;;  %v3897_v52 = vadd.f32 %v4763_v47, %v4762_v2  ;;  %v3904_v26 = vadd.f32 %v3643_v3, %v4762_v2  ;;  %v4768_v47 = vld [vmem:[#allocation16_spill] sm:$0xff]  ;;  %v4772_v3 = vld [vmem:[#allocation18_spill] sm:$0xff] }
 0x230   : > { %4761 = vst [vmem:[#allocation50_spill] sm:$0xff] %v3890_v35  ;;  %v1881_v31 = vadd.f32 %v1880_v57, %v3550_v5  ;;  %v3900_v48 = vpop.f32.mrb[61].mxu1  ;;  %v1882_v21 = vpop.f32.mrb[65].mxu0  ;;  %v3911_v35 = vadd.f32 %v4766_v55, %v3874_v19  ;;  %v3915_v42 = vadd.f32 %v4768_v47, %v3874_v19  ;;  %v4770_v57 = vld [vmem:[#allocation3_spill] sm:$0xff]  ;;  %v3923_v36 = vadd.f32 %v4772_v3, %v3870_v56  ;;  %v4775_v55 = vld [vmem:[#allocation22_spill] sm:$0xff] }
 0x231   : > { %4764 = vst [vmem:[#allocation4_spill] sm:$0xff] %v3900_v48  ;;  %v1883_v43 = vadd.f32 %v1882_v21, %v3550_v5  ;;  %v3907_v33 = vpop.f32.mrb[62].mxu1  ;;  %v1884_v0 = vpop.f32.mrb[66].mxu0  ;;  %v4771_v48 = vld [vmem:[#allocation17_spill] sm:$0xff]  ;;  %v3930_v46 = vadd.f32 %v4775_v55, %v4770_v57  ;;  %v4776_v47 = vld [vmem:[#allocation23_spill] sm:$0xff]  ;;  %v3945_v55 = vadd.f32 %v3708_v30, %v4779_v58 }
 0x232   : > { %4765 = vst [vmem:[#allocation14_spill] sm:$0xff] %v3907_v33  ;;  %4767 = vst [vmem:[#allocation15_spill] sm:$0xff] %v3911_v35  ;;  %v3919_v53 = vadd.f32 %v4771_v48, %v4770_v57  ;;  %v2236_v21 = vmax.f32 %v1881_v31, 0.0  ;;  %v1885_v33 = vadd.f32 %v1884_v0, %v3546_v4  ;;  %v3926_v59 = vpop.f32.mrb[63].mxu1  ;;  %v1886_v45 = vpop.f32.mrb[67].mxu0  ;;  %v3934_v19 = vadd.f32 %v4776_v47, %v3870_v56 }
 0x233   : > { %4769 = vst [vmem:[#allocation16_spill] sm:$0xff] %v3915_v42  ;;  %4773 = vst [vmem:[#allocation17_spill] sm:$0xff] %v3923_v36  ;;  %v2237_v48 = vmax.f32 %v1883_v43, 0.0  ;;  %v1887_v63 = vadd.f32 %v1886_v45, %v3546_v4  ;;  %v4778_v0 = vmax.f32 %v3677_v13, 0.0  ;;  %v3947_v57 = vpop.permute.xlu1 %1467  ;;  %v4781_v47 = vmax.f32 %v3680_v16, 0.0 }
 0x234   : > { %4774 = vst [vmem:[#allocation18_spill] sm:$0xff] %v3926_v59  ;;  %4777 = vst [vmem:[#allocation22_spill] sm:$0xff] %v3934_v19  ;;  %v2242_v59 = vmax.f32 %v1885_v33, 0.0  ;;  %v3970_v13 = vadd.f32 %v3725_v51, %v4779_v58  ;;  %v3976_v30 = vadd.f32 %v3710_v22, %v3947_v57  ;;  %v3983_v51 = vadd.f32 %v3727_v27, %v3947_v57 }
 0x235   : > { %v3941_v20 = vmax.f32 %v4778_v0, %v2236_v21  ;;  %4780 = vst [vmem:[#allocation23_spill] sm:$0xff] %v3947_v57  ;;  %v3951_v43 = vmax.f32 %v4781_v47, %v2237_v48  ;;  %v2243_v45 = vmax.f32 %v1887_v63, 0.0  ;;  %v4782_v21 = vmax.f32 %v3691_v41, 0.0 }
 0x236   : > { %v4783_v63 = vmax.f32 %v3715_v14, 0.0  ;;  %v4784_v27 = vmax.f32 %v3723_v15, 0.0  ;;  %v346_v15 = vld [vmem:[%s4649_s5 + $0x10] sm:$0xff] }
 0x237   : > { %v3958_v33 = vmax.f32 %v4782_v21, %v2242_v59  ;;  %v1890_v47 = vpop.f32.mrb[68].mxu0  ;;  %v2063_v3 = vpop.f32.mrb[64].mxu1 }
 0x238   : > { %v3966_v48 = vmax.f32 %v4783_v63, %v2243_v45  ;;  %v1891_v41 = vadd.f32 %v1890_v47, %v3554_v7  ;;  %v2064_v59 = vadd.f32 %v2063_v3, %v3542_v61  ;;  %v1892_v21 = vpop.f32.mrb[69].mxu0  ;;  %v2065_v0 = vpop.f32.mrb[65].mxu1 }
 0x239   : > { %v1893_v45 = vadd.f32 %v1892_v21, %v3554_v7  ;;  %v2066_v63 = vadd.f32 %v2065_v0, %v3542_v61  ;;  %v1894_v16 = vpop.f32.mrb[70].mxu0  ;;  %v2067_v56 = vpop.f32.mrb[66].mxu1  ;;  %v344_v0 = vld [vmem:[%s4649_s5] sm:$0xff] }
 0x23a   : > { %v2248_v47 = vmax.f32 %v1891_v41, 0.0  ;;  %v2226_v3 = vmax.f32 %v2064_v59, 0.0  ;;  %v1895_v31 = vadd.f32 %v1894_v16, %v3552_v6  ;;  %v2068_v19 = vadd.f32 %v2067_v56, %v3544_v62  ;;  %v1896_v22 = vpop.f32.mrb[71].mxu0  ;;  %v2069_v36 = vpop.f32.mrb[67].mxu1 }
 0x23b   : > { %v2249_v42 = vmax.f32 %v1893_v45, 0.0  ;;  %v2227_v14 = vmax.f32 %v2066_v63, 0.0  ;;  %v1897_v21 = vadd.f32 %v1896_v22, %v3552_v6  ;;  %v2070_v61 = vadd.f32 %v2069_v36, %v3544_v62  ;;  %v345_v45 = vld [vmem:[%s4649_s5 + $0x8] sm:$0xff] }
 0x23c   : > { %v3994_v41 = vmax.f32 %v4784_v27, %v2248_v47  ;;  %v2478_v16 = vmax.f32 %v3862_v39, %v2226_v3  ;;  %v2254_v59 = vmax.f32 %v1895_v31, 0.0  ;;  %v2232_v56 = vmax.f32 %v2068_v19, 0.0  ;;  %v4008_v47 = vpop.permute.xlu0 %1472  ;;  %v4786_v39 = vld [vmem:[#allocation5_spill] sm:$0xff] }
 0x23d   : > { %v4785_v63 = vmax.f32 %v3734_v28, 0.0  ;;  %v2479_v62 = vmax.f32 %v3868_v25, %v2227_v14  ;;  %v2255_v36 = vmax.f32 %v1897_v21, 0.0  ;;  %v2233_v57 = vmax.f32 %v2070_v61, 0.0  ;;  %v347_v25 = vld [vmem:[%s4649_s5 + $0x18] sm:$0xff] }
 0x23e   : > { %v4012_v19 = vadd.f32 %v3736_v29, %v4786_v39  ;;  %v4787_v31 = vmax.f32 %v3746_v12, 0.0  ;;  %v2480_v28 = vmax.f32 %v3878_v24, %v2232_v56  ;;  %v4024_v14 = vadd.f32 %v3738_v50, %v4008_v47 }
 0x23f   : > { %v4002_v22 = vmax.f32 %v4785_v63, %v2249_v42  ;;  %v2542_v42 = vmul.f32 %v2478_v16, %v344_v0  ;;  %v4789_v21 = vmax.f32 %v3754_v34, 0.0  ;;  %v2481_v29 = vmax.f32 %v3888_v54, %v2233_v57  ;;  %v1900_v12 = vpop.f32.mrb[72].mxu0  ;;  %v2073_v27 = vpop.f32.mrb[68].mxu1 }
 0x240   : > { %v4016_v3 = vmax.f32 %v4787_v31, %v2254_v59  ;;  %4788 = vst [vmem:[#allocation6_spill] sm:$0xff] %v4024_v14  ;;  %v2543_v59 = vmul.f32 %v2479_v62, %v345_v45  ;;  %v1901_v24 = vadd.f32 %v1900_v12, %v3558_v10  ;;  %v2074_v0 = vadd.f32 %v2073_v27, %v3550_v5  ;;  %v1902_v16 = vpop.f32.mrb[73].mxu0  ;;  %v2075_v56 = vpop.f32.mrb[69].mxu1 }
 0x241   : > { %v4028_v61 = vmax.f32 %v4789_v21, %v2255_v36  ;;  %v2544_v63 = vmul.f32 %v2480_v28, %v346_v15  ;;  %v2378_v31 = vmax.f32 %v3976_v30, 0.0  ;;  %v1903_v50 = vadd.f32 %v1902_v16, %v3558_v10  ;;  %v1904_v36 = vpop.f32.mrb[74].mxu0  ;;  %v2077_v21 = vpop.f32.mrb[70].mxu1  ;;  %v390_v30 = vld [vmem:[%s4649_s5 + $0x170] sm:$0xff] }
 0x242   : > { %v2076_v34 = vadd.f32 %v2075_v56, %v3550_v5  ;;  %v2606_v35 = vadd.f32 %v2543_v59, %v2542_v42  ;;  %v2545_v54 = vmul.f32 %v2481_v29, %v347_v25  ;;  %v2260_v57 = vmax.f32 %v1901_v24, 0.0  ;;  %v1906_v12 = vpop.f32.mrb[75].mxu0  ;;  %v2079_v27 = vpop.f32.mrb[71].mxu1  ;;  %v348_v5 = vld [vmem:[%s4649_s5 + $0x20] sm:$0xff] }
 0x243   : > { %v2238_v17 = vmax.f32 %v2074_v0, 0.0  ;;  %v1905_v45 = vadd.f32 %v1904_v36, %v3556_v8  ;;  %v2078_v62 = vadd.f32 %v2077_v21, %v3546_v4  ;;  %v2261_v14 = vmax.f32 %v1903_v50, 0.0  ;;  %v349_v0 = vld [vmem:[%s4649_s5 + $0x28] sm:$0xff] }
 0x244   : > { %v2239_v15 = vmax.f32 %v2076_v34, 0.0  ;;  %v1907_v28 = vadd.f32 %v1906_v12, %v3556_v8  ;;  %v2080_v16 = vadd.f32 %v2079_v27, %v3546_v4  ;;  %2607 = vadd.xlane.f32.xlu1 %v2606_v35  ;;  %v4790_v42 = vmax.f32 %v3770_v37, 0.0  ;;  %v350_v37 = vld [vmem:[%s4649_s5 + $0x30] sm:$0xff] }
 0x245   : > { %v2482_v29 = vmax.f32 %v3941_v20, %v2238_v17  ;;  %v2266_v59 = vmax.f32 %v1905_v45, 0.0  ;;  %v2244_v24 = vmax.f32 %v2078_v62, 0.0  ;;  %v4791_v56 = vmax.f32 %v3774_v38, 0.0  ;;  %v351_v38 = vld [vmem:[%s4649_s5 + $0x38] sm:$0xff] }
 0x246   : > { %v4045_v25 = vmax.f32 %v4790_v42, %v2260_v57  ;;  %v2483_v35 = vmax.f32 %v3951_v43, %v2239_v15  ;;  %v2267_v50 = vmax.f32 %v1907_v28, 0.0  ;;  %v2245_v34 = vmax.f32 %v2080_v16, 0.0 }
 0x247   : > { %v4053_v4 = vmax.f32 %v4791_v56, %v2261_v14  ;;  %v4792_v20 = vmax.f32 %v3790_v44, 0.0  ;;  %v2484_v36 = vmax.f32 %v3958_v33, %v2244_v24  ;;  %v2609_v21 = vadd.f32 %v2545_v54, %v2544_v63  ;;  %v1910_v12 = vpop.f32.mrb[76].mxu0  ;;  %v2083_v44 = vpop.f32.mrb[72].mxu1 }
 0x248   : > { %v2546_v57 = vmul.f32 %v2482_v29, %v348_v5  ;;  %v2295_v43 = vmax.f32 %v3970_v13, 0.0  ;;  %v4793_v14 = vmax.f32 %v3813_v60, 0.0  ;;  %v2485_v62 = vmax.f32 %v3966_v48, %v2245_v34  ;;  %v1912_v15 = vpop.f32.mrb[77].mxu0  ;;  %v2085_v28 = vpop.f32.mrb[73].mxu1  ;;  %v363_v13 = vld [vmem:[%s4649_s5 + $0x98] sm:$0xff] }
 0x249   : > { %v4061_v17 = vmax.f32 %v4792_v20, %v2266_v59  ;;  %v2547_v27 = vmul.f32 %v2483_v35, %v349_v0  ;;  %v4075_v33 = vadd.f32 %v3756_v18, %v4786_v39  ;;  %2610 = vadd.xlane.f32.xlu0 %v2609_v21  ;;  %v1911_v63 = vadd.f32 %v1910_v12, %v3562_v11  ;;  %v1914_v48 = vpop.f32.mrb[78].mxu0  ;;  %v2087_v42 = vpop.f32.mrb[74].mxu1  ;;  %v353_v12 = vld [vmem:[%s4649_s5 + $0x48] sm:$0xff] }
 0x24a   : > { %v4070_v45 = vmax.f32 %v4793_v14, %v2267_v50  ;;  %v2084_v54 = vadd.f32 %v2083_v44, %v3554_v7  ;;  %v2548_v16 = vmul.f32 %v2484_v36, %v350_v37  ;;  %v1913_v60 = vadd.f32 %v1912_v15, %v3562_v11  ;;  %v1916_v35 = vpop.f32.mrb[79].mxu0  ;;  %v2089_v50 = vpop.f32.mrb[75].mxu1 }
 0x24b   : > { %v2086_v5 = vadd.f32 %v2085_v28, %v3554_v7  ;;  %v2612_v29 = vadd.f32 %v2547_v27, %v2546_v57  ;;  %v2549_v59 = vmul.f32 %v2485_v62, %v351_v38  ;;  %v2272_v24 = vmax.f32 %v1911_v63, 0.0  ;;  %v352_v7 = vld [vmem:[%s4649_s5 + $0x40] sm:$0xff] }
 0x24c   : > { %v2250_v0 = vmax.f32 %v2084_v54, 0.0  ;;  %v1915_v18 = vadd.f32 %v1914_v48, %v3560_v1  ;;  %v2088_v56 = vadd.f32 %v2087_v42, %v3552_v6  ;;  %v2273_v34 = vmax.f32 %v1913_v60, 0.0 }
 0x24d   : > { %v2251_v20 = vmax.f32 %v2086_v5, 0.0  ;;  %v1917_v37 = vadd.f32 %v1916_v35, %v3560_v1  ;;  %v2090_v36 = vadd.f32 %v2089_v50, %v3552_v6  ;;  %v4794_v21 = vmax.f32 %v3827_v32, 0.0  ;;  %2613 = vadd.xlane.f32.xlu0 %v2612_v29  ;;  %v354_v32 = vld [vmem:[%s4649_s5 + $0x50] sm:$0xff] }
 0x24e   : > { %v2486_v38 = vmax.f32 %v3994_v41, %v2250_v0  ;;  %v2278_v14 = vmax.f32 %v1915_v18, 0.0  ;;  %v2256_v62 = vmax.f32 %v2088_v56, 0.0  ;;  %v4795_v44 = vmax.f32 %v3834_v40, 0.0  ;;  %v355_v40 = vld [vmem:[%s4649_s5 + $0x58] sm:$0xff] }
 0x24f   : > { %v4090_v57 = vmax.f32 %v4794_v21, %v2272_v24  ;;  %v2487_v27 = vmax.f32 %v4002_v22, %v2251_v20  ;;  %v2279_v63 = vmax.f32 %v1917_v37, 0.0  ;;  %v2257_v54 = vmax.f32 %v2090_v36, 0.0  ;;  %v1920_v29 = vpop.f32.mrb[80].mxu0  ;;  %v2093_v24 = vpop.f32.mrb[76].mxu1 }
 0x250   : > { %v4098_v6 = vmax.f32 %v4795_v44, %v2273_v34  ;;  %v4796_v41 = vmax.f32 %v3845_v9, 0.0  ;;  %v2488_v28 = vmax.f32 %v4016_v3, %v2256_v62  ;;  %v2615_v60 = vadd.f32 %v2549_v59, %v2548_v16  ;;  %v1922_v59 = vpop.f32.mrb[81].mxu0  ;;  %v2095_v18 = vpop.f32.mrb[77].mxu1 }
 0x251   : > { %v2550_v5 = vmul.f32 %v2486_v38, %v352_v7  ;;  %v4114_v22 = vadd.f32 %v3758_v23, %v4008_v47  ;;  %v4797_v48 = vmax.f32 %v3858_v49, 0.0  ;;  %v2489_v9 = vmax.f32 %v4028_v61, %v2257_v54  ;;  %v1924_v50 = vpop.f32.mrb[82].mxu0  ;;  %v2097_v34 = vpop.f32.mrb[78].mxu1  ;;  %v4798_v7 = vld [vmem:[#allocation3_spill] sm:$0xff] }
 0x252   : > { %v4106_v15 = vmax.f32 %v4796_v41, %v2278_v14  ;;  %v2551_v0 = vmul.f32 %v2487_v27, %v353_v12  ;;  %2616 = vadd.xlane.f32.xlu1 %v2615_v60  ;;  %v1921_v3 = vadd.f32 %v1920_v29, %v4762_v2  ;;  %v2094_v16 = vadd.f32 %v2093_v24, %v3558_v10  ;;  %v1926_v14 = vpop.f32.mrb[83].mxu0  ;;  %v2099_v62 = vpop.f32.mrb[79].mxu1 }
 0x253   : > { %v4118_v42 = vmax.f32 %v4797_v48, %v2279_v63  ;;  %v2552_v56 = vmul.f32 %v2488_v28, %v354_v32  ;;  %v2379_v23 = vmax.f32 %v3983_v51, 0.0  ;;  %v1923_v35 = vadd.f32 %v1922_v59, %v4762_v2  ;;  %v391_v51 = vld [vmem:[%s4649_s5 + $0x178] sm:$0xff] }
 0x254   : > { %v2096_v49 = vadd.f32 %v2095_v18, %v3558_v10  ;;  %v2618_v61 = vadd.f32 %v2551_v0, %v2550_v5  ;;  %v2553_v20 = vmul.f32 %v2489_v9, %v355_v40  ;;  %v2284_v37 = vmax.f32 %v1921_v3, 0.0  ;;  %v356_v10 = vld [vmem:[%s4649_s5 + $0x60] sm:$0xff]  ;;  %v357_v5 = vld [vmem:[%s4649_s5 + $0x68] sm:$0xff] }
 0x255   : > { %v2262_v36 = vmax.f32 %v2094_v16, 0.0  ;;  %v1925_v21 = vadd.f32 %v1924_v50, %v4798_v7  ;;  %v2098_v38 = vadd.f32 %v2097_v34, %v3556_v8  ;;  %v2285_v12 = vmax.f32 %v1923_v35, 0.0 }
 0x256   : > { %v2263_v44 = vmax.f32 %v2096_v49, 0.0  ;;  %v1927_v27 = vadd.f32 %v1926_v14, %v4798_v7  ;;  %v2100_v63 = vadd.f32 %v2099_v62, %v3556_v8  ;;  %2619 = vadd.xlane.f32.xlu0 %v2618_v61  ;;  %v4799_v54 = vmax.f32 %v3897_v52, 0.0  ;;  %v358_v52 = vld [vmem:[%s4649_s5 + $0x70] sm:$0xff] }
 0x257   : > { %v2490_v41 = vmax.f32 %v4045_v25, %v2262_v36  ;;  %v2290_v28 = vmax.f32 %v1925_v21, 0.0  ;;  %v2268_v60 = vmax.f32 %v2098_v38, 0.0  ;;  %v4800_v40 = vmax.f32 %v3904_v26, 0.0  ;;  %v359_v26 = vld [vmem:[%s4649_s5 + $0x78] sm:$0xff]  ;;  %v1930_v49 = vpop.f32.mrb[84].mxu0 }
 0x258   : > { %v4135_v32 = vmax.f32 %v4799_v54, %v2284_v37  ;;  %v2491_v48 = vmax.f32 %v4053_v4, %v2263_v44  ;;  %v2291_v9 = vmax.f32 %v1927_v27, 0.0  ;;  %v2269_v29 = vmax.f32 %v2100_v63, 0.0  ;;  %v1932_v61 = vpop.f32.mrb[85].mxu0 }
 0x259   : > { %v4143_v8 = vmax.f32 %v4800_v40, %v2285_v12  ;;  %v4801_v25 = vmax.f32 %v3919_v53, 0.0  ;;  %v2492_v0 = vmax.f32 %v4061_v17, %v2268_v60  ;;  %v2621_v3 = vadd.f32 %v2553_v20, %v2552_v56  ;;  %v2103_v53 = vpop.f32.mrb[80].mxu1  ;;  %v1934_v36 = vpop.f32.mrb[86].mxu0 }
 0x25a   : > { %v2554_v16 = vmul.f32 %v2490_v41, %v356_v10  ;;  %v2300_v4 = vmax.f32 %v4012_v19, 0.0  ;;  %v4802_v59 = vmax.f32 %v3930_v46, 0.0  ;;  %v2493_v35 = vmax.f32 %v4070_v45, %v2269_v29  ;;  %v2105_v20 = vpop.f32.mrb[81].mxu1  ;;  %v1936_v44 = vpop.f32.mrb[87].mxu0 }
 0x25b   : > { %v4151_v24 = vmax.f32 %v4801_v25, %v2290_v28  ;;  %v2555_v50 = vmul.f32 %v2491_v48, %v357_v5  ;;  %v2301_v34 = vmax.f32 %v4075_v33, 0.0  ;;  %2622 = vadd.xlane.f32.xlu1 %v2621_v3  ;;  %v1931_v17 = vadd.f32 %v1930_v49, %v4779_v58  ;;  %v2107_v21 = vpop.f32.mrb[82].mxu1 }
 0x25c   : > { %v4160_v18 = vmax.f32 %v4802_v59, %v2291_v9  ;;  %v2104_v56 = vadd.f32 %v2103_v53, %v3562_v11  ;;  %v2556_v37 = vmul.f32 %v2492_v0, %v358_v52  ;;  %v1933_v19 = vadd.f32 %v1932_v61, %v4779_v58  ;;  %v2109_v27 = vpop.f32.mrb[83].mxu1  ;;  %v361_v9 = vld [vmem:[%s4649_s5 + $0x88] sm:$0xff] }
 0x25d   : > { %v2106_v46 = vadd.f32 %v2105_v20, %v3562_v11  ;;  %v2624_v45 = vadd.f32 %v2555_v50, %v2554_v16  ;;  %v2557_v38 = vmul.f32 %v2493_v35, %v359_v26  ;;  %v2296_v14 = vmax.f32 %v1931_v17, 0.0  ;;  %v360_v11 = vld [vmem:[%s4649_s5 + $0x80] sm:$0xff]  ;;  %v4805_v50 = vld [vmem:[#allocation8_spill] sm:$0xff] }
 0x25e   : > { %v2274_v62 = vmax.f32 %v2104_v56, 0.0  ;;  %v1935_v33 = vadd.f32 %v1934_v36, %v4786_v39  ;;  %v2108_v12 = vadd.f32 %v2107_v21, %v3560_v1  ;;  %v2297_v63 = vmax.f32 %v1933_v19, 0.0 }
 0x25f   : > { %v2275_v10 = vmax.f32 %v2106_v46, 0.0  ;;  %v1937_v54 = vadd.f32 %v1936_v44, %v4786_v39  ;;  %v2110_v41 = vadd.f32 %v2109_v27, %v3560_v1  ;;  %2625 = vadd.xlane.f32.xlu0 %v2624_v45  ;;  %v4803_v28 = vmax.f32 %v3945_v55, 0.0  ;;  %v362_v55 = vld [vmem:[%s4649_s5 + $0x90] sm:$0xff]  ;;  %v1940_v35 = vpop.f32.mrb[88].mxu0  ;;  %v2113_v49 = vpop.f32.mrb[84].mxu1 }
 0x260   : > { %v2494_v5 = vmax.f32 %v4090_v57, %v2274_v62  ;;  %v2302_v40 = vmax.f32 %v1935_v33, 0.0  ;;  %v2280_v48 = vmax.f32 %v2108_v12, 0.0  ;;  %v4185_v1 = vmax.f32 %v2295_v43, %v2297_v63  ;;  %v4804_v43 = vld [vmem:[#allocation6_spill] sm:$0xff]  ;;  %v1942_v56 = vpop.f32.mrb[89].mxu0  ;;  %v2115_v61 = vpop.f32.mrb[85].mxu1 }
 0x261   : > { %v4177_v60 = vmax.f32 %v4803_v28, %v2296_v14  ;;  %v2495_v29 = vmax.f32 %v4098_v6, %v2275_v10  ;;  %v2303_v52 = vmax.f32 %v1937_v54, 0.0  ;;  %v2281_v25 = vmax.f32 %v2110_v41, 0.0  ;;  %v1944_v19 = vpop.f32.mrb[90].mxu0  ;;  %v2117_v46 = vpop.f32.mrb[86].mxu1  ;;  %v4807_v41 = vld [vmem:[#allocation19_spill] sm:$0xff] }
 0x262   : > { %v4191_v0 = vmax.f32 %v2300_v4, %v2302_v40  ;;  %v2496_v57 = vmax.f32 %v4106_v15, %v2280_v48  ;;  %v2627_v3 = vadd.f32 %v2557_v38, %v2556_v37  ;;  %v2558_v16 = vmul.f32 %v2494_v5, %v360_v11  ;;  %v4806_v38 = vld [vmem:[#allocation7_spill] sm:$0xff]  ;;  %v1946_v33 = vpop.f32.mrb[91].mxu0  ;;  %v2119_v12 = vpop.f32.mrb[87].mxu1 }
 0x263   : > { %v2384_v26 = vmax.f32 %v4804_v43, 0.0  ;;  %v4198_v59 = vmax.f32 %v2301_v34, %v2303_v52  ;;  %v2497_v6 = vmax.f32 %v4118_v42, %v2281_v25  ;;  %v2559_v53 = vmul.f32 %v2495_v29, %v361_v9  ;;  %v4213_v54 = vpop.permute.xlu1 %1477  ;;  %v365_v9 = vld [vmem:[%s4649_s5 + $0xa8] sm:$0xff] }
 0x264   : > { %v2385_v4 = vmax.f32 %v4114_v22, 0.0  ;;  %2628 = vadd.xlane.f32.xlu1 %v2627_v3  ;;  %v1941_v15 = vadd.f32 %v1940_v35, %v4805_v50  ;;  %v2114_v17 = vadd.f32 %v2113_v49, %v4762_v2  ;;  %v2560_v20 = vmul.f32 %v2496_v57, %v362_v55  ;;  %v366_v3 = vld [vmem:[%s4649_s5 + $0xb0] sm:$0xff] }
 0x265   : > { %v1943_v37 = vadd.f32 %v1942_v56, %v4805_v50  ;;  %v2116_v34 = vadd.f32 %v2115_v61, %v4762_v2  ;;  %v2630_v42 = vadd.f32 %v2559_v53, %v2558_v16  ;;  %v2561_v36 = vmul.f32 %v2497_v6, %v363_v13  ;;  %v364_v2 = vld [vmem:[%s4649_s5 + $0xa0] sm:$0xff]  ;;  %v4811_v16 = vld [vmem:[#allocation20_spill] sm:$0xff]  ;;  %v367_v53 = vld [vmem:[%s4649_s5 + $0xb8] sm:$0xff] }
 0x266   : > { %v2308_v21 = vmax.f32 %v1941_v15, 0.0  ;;  %v2286_v45 = vmax.f32 %v2114_v17, 0.0  ;;  %v1945_v14 = vadd.f32 %v1944_v19, %v4806_v38  ;;  %v2118_v62 = vadd.f32 %v2117_v46, %v4798_v7  ;;  %v4813_v15 = vld [vmem:[#allocation21_spill] sm:$0xff]  ;;  %v4815_v19 = vld [vmem:[#allocation40_spill] sm:$0xff] }
 0x267   : > { %v2309_v44 = vmax.f32 %v1943_v37, 0.0  ;;  %v2287_v27 = vmax.f32 %v2116_v34, 0.0  ;;  %v1947_v63 = vadd.f32 %v1946_v33, %v4806_v38  ;;  %v2120_v10 = vadd.f32 %v2119_v12, %v4798_v7  ;;  %2631 = vadd.xlane.f32.xlu0 %v2630_v42  ;;  %v4809_v7 = vld [vmem:[#allocation24_spill] sm:$0xff]  ;;  %v1950_v61 = vpop.f32.mrb[92].mxu0  ;;  %v2123_v37 = vpop.f32.mrb[88].mxu1 }
 0x268   : > { %v4808_v11 = vmax.f32 %v4807_v41, 0.0  ;;  %v2498_v5 = vmax.f32 %v4135_v32, %v2286_v45  ;;  %v2314_v40 = vmax.f32 %v1945_v14, 0.0  ;;  %v2292_v48 = vmax.f32 %v2118_v62, 0.0  ;;  %v4817_v14 = vld [vmem:[#allocation42_spill] sm:$0xff]  ;;  %v4818_v41 = vld [vmem:[#allocation9_spill] sm:$0xff] }
 0x269   : > { %v4810_v29 = vmax.f32 %v4809_v7, 0.0  ;;  %v2499_v25 = vmax.f32 %v4143_v8, %v2287_v27  ;;  %v2315_v55 = vmax.f32 %v1947_v63, 0.0  ;;  %v2293_v57 = vmax.f32 %v2120_v10, 0.0 }
 0x26a   : > { %v4217_v28 = vmax.f32 %v4808_v11, %v2308_v21  ;;  %v4812_v32 = vmax.f32 %v4811_v16, 0.0  ;;  %v2500_v6 = vmax.f32 %v4151_v24, %v2292_v48  ;;  %v2633_v35 = vadd.f32 %v2561_v36, %v2560_v20  ;;  %v4816_v24 = vld [vmem:[#allocation10_spill] sm:$0xff]  ;;  %v1952_v36 = vpop.f32.mrb[93].mxu0  ;;  %v2125_v21 = vpop.f32.mrb[89].mxu1 }
 0x26b   : > { %v4225_v52 = vmax.f32 %v4810_v29, %v2309_v44  ;;  %v2562_v49 = vmul.f32 %v2498_v5, %v364_v2  ;;  %v4814_v8 = vmax.f32 %v4813_v15, 0.0  ;;  %v2501_v56 = vmax.f32 %v4160_v18, %v2293_v57  ;;  %v1954_v12 = vpop.f32.mrb[94].mxu0  ;;  %v2127_v44 = vpop.f32.mrb[90].mxu1 }
 0x26c   : > { %v4233_v13 = vmax.f32 %v4812_v32, %v2314_v40  ;;  %v2563_v34 = vmul.f32 %v2499_v25, %v365_v9  ;;  %v4246_v46 = vadd.f32 %v4815_v19, %v4213_v54  ;;  %2634 = vadd.xlane.f32.xlu1 %v2633_v35  ;;  %v1951_v20 = vadd.f32 %v1950_v61, %v4816_v24  ;;  %v1956_v40 = vpop.f32.mrb[95].mxu0  ;;  %v2129_v48 = vpop.f32.mrb[91].mxu1  ;;  %v369_v35 = vld [vmem:[%s4649_s5 + $0xc8] sm:$0xff]  ;;  %v370_v61 = vld [vmem:[%s4649_s5 + $0xd0] sm:$0xff] }
 0x26d   : > { %v4241_v17 = vmax.f32 %v4814_v8, %v2315_v55  ;;  %v2124_v42 = vadd.f32 %v2123_v37, %v4779_v58  ;;  %v2564_v45 = vmul.f32 %v2500_v6, %v366_v3  ;;  %v4252_v62 = vadd.f32 %v4817_v14, %v4213_v54  ;;  %v4819_v55 = vld [vmem:[#allocation25_spill] sm:$0xff]  ;;  %v4279_v37 = vpop.permute.xlu0 %1482 }
 0x26e   : > { %v1953_v18 = vadd.f32 %v1952_v36, %v4816_v24  ;;  %v2126_v33 = vadd.f32 %v2125_v21, %v4779_v58  ;;  %v2636_v27 = vadd.f32 %v2563_v34, %v2562_v49  ;;  %v2565_v63 = vmul.f32 %v2501_v56, %v367_v53  ;;  %v368_v58 = vld [vmem:[%s4649_s5 + $0xc0] sm:$0xff] }
 0x26f   : > { %v2320_v10 = vmax.f32 %v1951_v20, 0.0  ;;  %v2298_v2 = vmax.f32 %v2124_v42, 0.0  ;;  %v1955_v11 = vadd.f32 %v1954_v12, %v4818_v41  ;;  %v2128_v5 = vadd.f32 %v2127_v44, %v4786_v39  ;;  %v4821_v49 = vld [vmem:[#allocation26_spill] sm:$0xff]  ;;  %v4825_v21 = vld [vmem:[#allocation43_spill] sm:$0xff] }
 0x270   : > { %v2321_v9 = vmax.f32 %v1953_v18, 0.0  ;;  %v2299_v7 = vmax.f32 %v2126_v33, 0.0  ;;  %v1957_v29 = vadd.f32 %v1956_v40, %v4818_v41  ;;  %v2130_v25 = vadd.f32 %v2129_v48, %v4786_v39  ;;  %2637 = vadd.xlane.f32.xlu0 %v2636_v27  ;;  %v4826_v18 = vld [vmem:[#allocation30_spill] sm:$0xff]  ;;  %v1960_v27 = vpop.f32.mrb[96].mxu0 }
 0x271   : > { %v4820_v57 = vmax.f32 %v4819_v55, 0.0  ;;  %v2502_v16 = vmax.f32 %v4177_v60, %v2298_v2  ;;  %v2326_v32 = vmax.f32 %v1955_v11, 0.0  ;;  %v2304_v6 = vmax.f32 %v2128_v5, 0.0  ;;  %v4823_v60 = vld [vmem:[#allocation27_spill] sm:$0xff]  ;;  %v1962_v11 = vpop.f32.mrb[97].mxu0 }
 0x272   : > { %v4822_v53 = vmax.f32 %v4821_v49, 0.0  ;;  %v2503_v15 = vmax.f32 %v4185_v1, %v2299_v7  ;;  %v2327_v8 = vmax.f32 %v1957_v29, 0.0  ;;  %v2305_v56 = vmax.f32 %v2130_v25, 0.0  ;;  %v371_v1 = vld [vmem:[%s4649_s5 + $0xd8] sm:$0xff]  ;;  %v1964_v29 = vpop.f32.mrb[98].mxu0 }
 0x273   : > { %v4265_v3 = vmax.f32 %v4820_v57, %v2320_v10  ;;  %v4824_v34 = vmax.f32 %v4823_v60, 0.0  ;;  %v2504_v20 = vmax.f32 %v4191_v0, %v2304_v6  ;;  %v2639_v42 = vadd.f32 %v2565_v63, %v2564_v45  ;;  %v2133_v10 = vpop.f32.mrb[92].mxu1  ;;  %v4828_v0 = vld [vmem:[#allocation13_spill] sm:$0xff] }
 0x274   : > { %v4273_v39 = vmax.f32 %v4822_v53, %v2321_v9  ;;  %v2566_v36 = vmul.f32 %v2502_v16, %v368_v58  ;;  %v4291_v14 = vadd.f32 %v4825_v21, %v4279_v37  ;;  %v4827_v33 = vmax.f32 %v4826_v18, 0.0  ;;  %v2135_v5 = vpop.f32.mrb[93].mxu1  ;;  %v4829_v16 = vld [vmem:[#allocation12_spill] sm:$0xff]  ;;  %v4832_v21 = vld [vmem:[#allocation33_spill] sm:$0xff] }
 0x275   : > { %v4283_v19 = vmax.f32 %v4824_v34, %v2326_v32  ;;  %v2505_v44 = vmax.f32 %v4198_v59, %v2305_v56  ;;  %v2567_v2 = vmul.f32 %v2503_v15, %v369_v35  ;;  %2640 = vadd.xlane.f32.xlu1 %v2639_v42  ;;  %v1961_v45 = vadd.f32 %v1960_v27, %v4828_v0  ;;  %v2137_v25 = vpop.f32.mrb[94].mxu1  ;;  %v1966_v35 = vpop.f32.mrb[99].mxu0 }
 0x276   : > { %v4295_v12 = vmax.f32 %v4827_v33, %v2327_v8  ;;  %v2134_v63 = vadd.f32 %v2133_v10, %v4805_v50  ;;  %v2568_v40 = vmul.f32 %v2504_v20, %v370_v61  ;;  %v2390_v48 = vmax.f32 %v4246_v46, 0.0  ;;  %v2139_v49 = vpop.f32.mrb[95].mxu1  ;;  %v4830_v61 = vld [vmem:[#allocation31_spill] sm:$0xff]  ;;  %v374_v10 = vld [vmem:[%s4649_s5 + $0xf0] sm:$0xff] }
 0x277   : > { %v1963_v9 = vadd.f32 %v1962_v11, %v4828_v0  ;;  %v2136_v7 = vadd.f32 %v2135_v5, %v4805_v50  ;;  %v2642_v59 = vadd.f32 %v2567_v2, %v2566_v36  ;;  %v2569_v58 = vmul.f32 %v2505_v44, %v371_v1  ;;  %v372_v50 = vld [vmem:[%s4649_s5 + $0xe0] sm:$0xff]  ;;  %v373_v1 = vld [vmem:[%s4649_s5 + $0xe8] sm:$0xff]  ;;  %v394_v46 = vld [vmem:[%s4649_s5 + $0x190] sm:$0xff] }
 0x278   : > { %v2332_v55 = vmax.f32 %v1961_v45, 0.0  ;;  %v2310_v57 = vmax.f32 %v2134_v63, 0.0  ;;  %v1965_v32 = vadd.f32 %v1964_v29, %v4829_v16  ;;  %v2138_v6 = vadd.f32 %v2137_v25, %v4806_v38  ;;  %v4834_v2 = vld [vmem:[#allocation32_spill] sm:$0xff]  ;;  %v4837_v29 = vld [vmem:[#allocation34_spill] sm:$0xff] }
 0x279   : > { %v2333_v53 = vmax.f32 %v1963_v9, 0.0  ;;  %v2311_v15 = vmax.f32 %v2136_v7, 0.0  ;;  %v1967_v8 = vadd.f32 %v1966_v35, %v4829_v16  ;;  %v2140_v56 = vadd.f32 %v2139_v49, %v4806_v38  ;;  %2643 = vadd.xlane.f32.xlu0 %v2642_v59  ;;  %v375_v9 = vld [vmem:[%s4649_s5 + $0xf8] sm:$0xff] }
 0x27a   : > { %v4831_v60 = vmax.f32 %v4830_v61, 0.0  ;;  %v2506_v20 = vmax.f32 %v4217_v28, %v2310_v57  ;;  %v2338_v42 = vmax.f32 %v1965_v32, 0.0  ;;  %v2316_v36 = vmax.f32 %v2138_v6, 0.0  ;;  %v1970_v57 = vpop.f32.mrb[100].mxu0  ;;  %v2143_v32 = vpop.f32.mrb[96].mxu1 }
 0x27b   : > { %v4833_v18 = vmax.f32 %v4832_v21, 0.0  ;;  %v2507_v33 = vmax.f32 %v4225_v52, %v2311_v15  ;;  %v2339_v44 = vmax.f32 %v1967_v8, 0.0  ;;  %v2317_v27 = vmax.f32 %v2140_v56, 0.0  ;;  %v4836_v52 = vld [vmem:[#allocation44_spill] sm:$0xff]  ;;  %v1972_v35 = vpop.f32.mrb[101].mxu0  ;;  %v2145_v49 = vpop.f32.mrb[97].mxu1 }
 0x27c   : > { %v4312_v34 = vmax.f32 %v4831_v60, %v2332_v55  ;;  %v4835_v28 = vmax.f32 %v4834_v2, 0.0  ;;  %v2508_v63 = vmax.f32 %v4233_v13, %v2316_v36  ;;  %v2645_v11 = vadd.f32 %v2569_v58, %v2568_v40  ;;  %v4839_v13 = vld [vmem:[#allocation29_spill] sm:$0xff]  ;;  %v2147_v61 = vpop.f32.mrb[98].mxu1  ;;  %v4840_v36 = vld [vmem:[#allocation28_spill] sm:$0xff] }
 0x27d   : > { %v4320_v38 = vmax.f32 %v4833_v18, %v2333_v53  ;;  %v2570_v5 = vmul.f32 %v2506_v20, %v372_v50  ;;  %v4336_v7 = vadd.f32 %v4836_v52, %v4279_v37  ;;  %v4838_v25 = vmax.f32 %v4837_v29, 0.0  ;;  %v1974_v50 = vpop.f32.mrb[102].mxu0  ;;  %v377_v29 = vld [vmem:[%s4649_s5 + $0x108] sm:$0xff] }
 0x27e   : > { %v4328_v45 = vmax.f32 %v4835_v28, %v2338_v42  ;;  %v2509_v55 = vmax.f32 %v4241_v17, %v2317_v27  ;;  %v2571_v6 = vmul.f32 %v2507_v33, %v373_v1  ;;  %2646 = vadd.xlane.f32.xlu1 %v2645_v11  ;;  %v1971_v40 = vadd.f32 %v1970_v57, %v4839_v13  ;;  %v1976_v18 = vpop.f32.mrb[103].mxu0  ;;  %v2149_v33 = vpop.f32.mrb[99].mxu1  ;;  %v4841_v28 = vld [vmem:[#allocation35_spill] sm:$0xff] }
 0x27f   : > { %v4340_v59 = vmax.f32 %v4838_v25, %v2339_v44  ;;  %v2144_v58 = vadd.f32 %v2143_v32, %v4816_v24  ;;  %v2572_v53 = vmul.f32 %v2508_v63, %v374_v10  ;;  %v2391_v15 = vmax.f32 %v4252_v62, 0.0  ;;  %v4843_v25 = vld [vmem:[#allocation36_spill] sm:$0xff]  ;;  %v395_v62 = vld [vmem:[%s4649_s5 + $0x198] sm:$0xff] }
 0x280   : > { %v1973_v8 = vadd.f32 %v1972_v35, %v4839_v13  ;;  %v2146_v56 = vadd.f32 %v2145_v49, %v4816_v24  ;;  %v2648_v17 = vadd.f32 %v2571_v6, %v2570_v5  ;;  %v2573_v60 = vmul.f32 %v2509_v55, %v375_v9  ;;  %v376_v24 = vld [vmem:[%s4649_s5 + $0x100] sm:$0xff] }
 0x281   : > { %v2344_v20 = vmax.f32 %v1971_v40, 0.0  ;;  %v2322_v42 = vmax.f32 %v2144_v58, 0.0  ;;  %v1975_v1 = vadd.f32 %v1974_v50, %v4840_v36  ;;  %v2148_v21 = vadd.f32 %v2147_v61, %v4818_v41  ;;  %v378_v40 = vld [vmem:[%s4649_s5 + $0x110] sm:$0xff]  ;;  %v379_v50 = vld [vmem:[%s4649_s5 + $0x118] sm:$0xff] }
 0x282   : > { %v2345_v44 = vmax.f32 %v1973_v8, 0.0  ;;  %v2323_v27 = vmax.f32 %v2146_v56, 0.0  ;;  %v1977_v10 = vadd.f32 %v1976_v18, %v4840_v36  ;;  %v2150_v2 = vadd.f32 %v2149_v33, %v4818_v41  ;;  %2649 = vadd.xlane.f32.xlu0 %v2648_v17  ;;  %v4845_v58 = vld [vmem:[#allocation37_spill] sm:$0xff] }
 0x283   : > { %v4842_v63 = vmax.f32 %v4841_v28, 0.0  ;;  %v2510_v5 = vmax.f32 %v4265_v3, %v2322_v42  ;;  %v2350_v9 = vmax.f32 %v1975_v1, 0.0  ;;  %v2328_v52 = vmax.f32 %v2148_v21, 0.0  ;;  %v4847_v61 = vld [vmem:[#allocation41_spill] sm:$0xff]  ;;  %v1980_v1 = vpop.f32.mrb[104].mxu0  ;;  %v2153_v21 = vpop.f32.mrb[100].mxu1 }
 0x284   : > { %v4844_v55 = vmax.f32 %v4843_v25, 0.0  ;;  %v2511_v57 = vmax.f32 %v4273_v39, %v2323_v27  ;;  %v2351_v32 = vmax.f32 %v1977_v10, 0.0  ;;  %v2329_v6 = vmax.f32 %v2150_v2, 0.0  ;;  %v2155_v27 = vpop.f32.mrb[101].mxu1 }
 0x285   : > { %v4357_v11 = vmax.f32 %v4842_v63, %v2344_v20  ;;  %v4846_v3 = vmax.f32 %v4845_v58, 0.0  ;;  %v2512_v49 = vmax.f32 %v4283_v19, %v2328_v52  ;;  %v2651_v8 = vadd.f32 %v2573_v60, %v2572_v53  ;;  %v4849_v19 = vld [vmem:[#allocation39_spill] sm:$0xff]  ;;  %v2157_v63 = vpop.f32.mrb[102].mxu1 }
 0x286   : > { %v4365_v41 = vmax.f32 %v4844_v55, %v2345_v44  ;;  %v2574_v56 = vmul.f32 %v2510_v5, %v376_v24  ;;  %v2396_v39 = vmax.f32 %v4291_v14, 0.0  ;;  %v4848_v17 = vmax.f32 %v4847_v61, 0.0  ;;  %v1982_v44 = vpop.f32.mrb[105].mxu0 }
 0x287   : > { %v4373_v35 = vmax.f32 %v4846_v3, %v2350_v9  ;;  %v2513_v42 = vmax.f32 %v4295_v12, %v2329_v6  ;;  %v2575_v18 = vmul.f32 %v2511_v57, %v377_v29  ;;  %v2397_v33 = vmax.f32 %v4336_v7, 0.0  ;;  %2652 = vadd.xlane.f32.xlu1 %v2651_v8  ;;  %v1984_v28 = vpop.f32.mrb[106].mxu0  ;;  %v4850_v29 = vld [vmem:[#allocation38_spill] sm:$0xff]  ;;  %v4851_v8 = vld [vmem:[#allocation45_spill] sm:$0xff] }
 0x288   : > { %v4382_v20 = vmax.f32 %v4848_v17, %v2351_v32  ;;  %v1981_v53 = vadd.f32 %v1980_v1, %v4849_v19  ;;  %v2154_v60 = vadd.f32 %v2153_v21, %v4828_v0  ;;  %v2576_v10 = vmul.f32 %v2512_v49, %v378_v40  ;;  %v1986_v57 = vpop.f32.mrb[107].mxu0  ;;  %v2159_v32 = vpop.f32.mrb[103].mxu1  ;;  %v381_v1 = vld [vmem:[%s4649_s5 + $0x128] sm:$0xff] }
 0x289   : > { %v1983_v2 = vadd.f32 %v1982_v44, %v4849_v19  ;;  %v2156_v24 = vadd.f32 %v2155_v27, %v4828_v0  ;;  %v2654_v12 = vadd.f32 %v2575_v18, %v2574_v56  ;;  %v2577_v5 = vmul.f32 %v2513_v42, %v379_v50  ;;  %v380_v0 = vld [vmem:[%s4649_s5 + $0x120] sm:$0xff]  ;;  %v4397_v49 = vpop.permute.xlu1 %1487  ;;  %v382_v27 = vld [vmem:[%s4649_s5 + $0x130] sm:$0xff] }
 0x28a   : > { %v2356_v9 = vmax.f32 %v1981_v53, 0.0  ;;  %v2334_v52 = vmax.f32 %v2154_v60, 0.0  ;;  %v1985_v25 = vadd.f32 %v1984_v28, %v4850_v29  ;;  %v2158_v55 = vadd.f32 %v2157_v63, %v4829_v16 }
 0x28b   : > { %v2357_v6 = vmax.f32 %v1983_v2, 0.0  ;;  %v2335_v58 = vmax.f32 %v2156_v24, 0.0  ;;  %v1987_v40 = vadd.f32 %v1986_v57, %v4850_v29  ;;  %v2160_v3 = vadd.f32 %v2159_v32, %v4829_v16  ;;  %2655 = vadd.xlane.f32.xlu0 %v2654_v12  ;;  %v4853_v16 = vld [vmem:[#allocation46_spill] sm:$0xff]  ;;  %v4855_v2 = vld [vmem:[#allocation47_spill] sm:$0xff]  ;;  %v1990_v57 = vpop.f32.mrb[108].mxu0  ;;  %v2163_v32 = vpop.f32.mrb[104].mxu1 }
 0x28c   : > { %v4852_v56 = vmax.f32 %v4851_v8, 0.0  ;;  %v2514_v61 = vmax.f32 %v4312_v34, %v2334_v52  ;;  %v2362_v17 = vmax.f32 %v1985_v25, 0.0  ;;  %v2340_v42 = vmax.f32 %v2158_v55, 0.0  ;;  %v4857_v52 = vld [vmem:[#allocation11_spill] sm:$0xff] }
 0x28d   : > { %v4854_v21 = vmax.f32 %v4853_v16, 0.0  ;;  %v2515_v53 = vmax.f32 %v4320_v38, %v2335_v58  ;;  %v2363_v60 = vmax.f32 %v1987_v40, 0.0  ;;  %v2341_v44 = vmax.f32 %v2160_v3, 0.0  ;;  %v4859_v58 = vld [vmem:[#allocation50_spill] sm:$0xff]  ;;  %v1992_v3 = vpop.f32.mrb[109].mxu0 }
 0x28e   : > { %v4401_v50 = vmax.f32 %v4852_v56, %v2356_v9  ;;  %v4856_v34 = vmax.f32 %v4855_v2, 0.0  ;;  %v2516_v28 = vmax.f32 %v4328_v45, %v2340_v42  ;;  %v2657_v63 = vadd.f32 %v2577_v5, %v2576_v10  ;;  %v383_v9 = vld [vmem:[%s4649_s5 + $0x138] sm:$0xff]  ;;  %v4861_v56 = vld [vmem:[#allocation4_spill] sm:$0xff]  ;;  %v1994_v42 = vpop.f32.mrb[110].mxu0 }
 0x28f   : > { %v4409_v18 = vmax.f32 %v4854_v21, %v2357_v6  ;;  %v2578_v12 = vmul.f32 %v2514_v61, %v380_v0  ;;  %v4858_v38 = vmax.f32 %v4857_v52, 0.0  ;;  %v2517_v55 = vmax.f32 %v4340_v59, %v2341_v44  ;;  %v4860_v45 = vld [vmem:[#allocation49_spill] sm:$0xff]  ;;  %v2165_v0 = vpop.f32.mrb[105].mxu1  ;;  %v4862_v44 = vld [vmem:[#allocation48_spill] sm:$0xff] }
 0x290   : > { %v4417_v24 = vmax.f32 %v4856_v34, %v2362_v17  ;;  %v2579_v6 = vmul.f32 %v2515_v53, %v381_v1  ;;  %v4430_v40 = vadd.f32 %v4859_v58, %v4397_v49  ;;  %2658 = vadd.xlane.f32.xlu1 %v2657_v63  ;;  %v1991_v10 = vadd.f32 %v1990_v57, %v4860_v45  ;;  %v2167_v1 = vpop.f32.mrb[106].mxu1  ;;  %v1996_v63 = vpop.f32.mrb[111].mxu0 }
 0x291   : > { %v4425_v25 = vmax.f32 %v4858_v38, %v2363_v60  ;;  %v2164_v5 = vadd.f32 %v2163_v32, %v4839_v13  ;;  %v2580_v8 = vmul.f32 %v2516_v28, %v382_v27  ;;  %v4436_v61 = vadd.f32 %v4861_v56, %v4397_v49  ;;  %v2169_v27 = vpop.f32.mrb[107].mxu1 }
 0x292   : > { %v1993_v59 = vadd.f32 %v1992_v3, %v4860_v45  ;;  %v2166_v17 = vadd.f32 %v2165_v0, %v4839_v13  ;;  %v2660_v16 = vadd.f32 %v2579_v6, %v2578_v12  ;;  %v2581_v21 = vmul.f32 %v2517_v55, %v383_v9  ;;  %v384_v13 = vld [vmem:[%s4649_s5 + $0x140] sm:$0xff] }
 0x293   : > { %v2368_v53 = vmax.f32 %v1991_v10, 0.0  ;;  %v2346_v60 = vmax.f32 %v2164_v5, 0.0  ;;  %v1995_v2 = vadd.f32 %v1994_v42, %v4862_v44  ;;  %v2168_v34 = vadd.f32 %v2167_v1, %v4840_v36  ;;  %v4863_v12 = vld [vmem:[#allocation15_spill] sm:$0xff]  ;;  %v4865_v5 = vld [vmem:[#allocation16_spill] sm:$0xff]  ;;  %v4463_v42 = vpop.permute.xlu0 %1492 }
 0x294   : > { %v2369_v28 = vmax.f32 %v1993_v59, 0.0  ;;  %v2347_v52 = vmax.f32 %v2166_v17, 0.0  ;;  %v1997_v38 = vadd.f32 %v1996_v63, %v4862_v44  ;;  %v2170_v57 = vadd.f32 %v2169_v27, %v4840_v36  ;;  %2661 = vadd.xlane.f32.xlu0 %v2660_v16  ;;  %v385_v10 = vld [vmem:[%s4649_s5 + $0x148] sm:$0xff]  ;;  %v386_v17 = vld [vmem:[%s4649_s5 + $0x150] sm:$0xff]  ;;  %v4870_v27 = vld [vmem:[#allocation22_spill] sm:$0xff] }
 0x295   : > { %v4864_v9 = vmax.f32 %v4863_v12, 0.0  ;;  %v2518_v32 = vmax.f32 %v4357_v11, %v2346_v60  ;;  %v2374_v6 = vmax.f32 %v1995_v2, 0.0  ;;  %v2352_v58 = vmax.f32 %v2168_v34, 0.0  ;;  %v4867_v11 = vld [vmem:[#allocation17_spill] sm:$0xff]  ;;  %v4869_v34 = vld [vmem:[#allocation14_spill] sm:$0xff]  ;;  %v2173_v12 = vpop.f32.mrb[108].mxu1 }
 0x296   : > { %v4866_v3 = vmax.f32 %v4865_v5, 0.0  ;;  %v2519_v0 = vmax.f32 %v4365_v41, %v2347_v52  ;;  %v2375_v56 = vmax.f32 %v1997_v38, 0.0  ;;  %v2353_v59 = vmax.f32 %v2170_v57, 0.0  ;;  %v387_v41 = vld [vmem:[%s4649_s5 + $0x158] sm:$0xff]  ;;  %v2000_v57 = vpop.f32.mrb[112].mxu0 }
 0x297   : > { %v4449_v55 = vmax.f32 %v4864_v9, %v2368_v53  ;;  %v4868_v1 = vmax.f32 %v4867_v11, 0.0  ;;  %v2520_v53 = vmax.f32 %v4373_v35, %v2352_v58  ;;  %v2663_v60 = vadd.f32 %v2581_v21, %v2580_v8  ;;  %v4872_v35 = vld [vmem:[#allocation23_spill] sm:$0xff] }
 0x298   : > { %v4457_v36 = vmax.f32 %v4866_v3, %v2369_v28  ;;  %v2582_v2 = vmul.f32 %v2518_v32, %v384_v13  ;;  %v4475_v63 = vadd.f32 %v4869_v34, %v4463_v42  ;;  %v4871_v28 = vmax.f32 %v4870_v27, 0.0  ;;  %v2002_v13 = vpop.f32.mrb[113].mxu0  ;;  %v2175_v32 = vpop.f32.mrb[109].mxu1 }
 0x299   : > { %v4467_v16 = vmax.f32 %v4868_v1, %v2374_v6  ;;  %v2521_v38 = vmax.f32 %v4382_v20, %v2353_v59  ;;  %v2583_v9 = vmul.f32 %v2519_v0, %v385_v10  ;;  %2664 = vadd.xlane.f32.xlu1 %v2663_v60  ;;  %v2001_v8 = vadd.f32 %v2000_v57, %v4872_v35  ;;  %v2177_v11 = vpop.f32.mrb[110].mxu1 }
 0x29a   : > { %v4479_v52 = vmax.f32 %v4871_v28, %v2375_v56  ;;  %v2174_v21 = vadd.f32 %v2173_v12, %v4849_v19  ;;  %v2584_v6 = vmul.f32 %v2520_v53, %v386_v17  ;;  %v2402_v58 = vmax.f32 %v4430_v40, 0.0  ;;  %v2004_v56 = vpop.f32.mrb[114].mxu0  ;;  %v2179_v27 = vpop.f32.mrb[111].mxu1  ;;  %v398_v40 = vld [vmem:[%s4649_s5 + $0x1b0] sm:$0xff] }
 0x29b   : > { %v2003_v5 = vadd.f32 %v2002_v13, %v4872_v35  ;;  %v2176_v3 = vadd.f32 %v2175_v32, %v4849_v19  ;;  %v2666_v20 = vadd.f32 %v2583_v9, %v2582_v2  ;;  %v2585_v59 = vmul.f32 %v2521_v38, %v387_v41  ;;  %v2006_v34 = vpop.f32.mrb[115].mxu0  ;;  %v388_v19 = vld [vmem:[%s4649_s5 + $0x160] sm:$0xff]  ;;  %v389_v9 = vld [vmem:[%s4649_s5 + $0x168] sm:$0xff] }
 0x29c   : > { %v2380_v1 = vmax.f32 %v2001_v8, 0.0  ;;  %v2358_v10 = vmax.f32 %v2174_v21, 0.0  ;;  %v2005_v0 = vadd.f32 %v2004_v56, %v4008_v47  ;;  %v2178_v60 = vadd.f32 %v2177_v11, %v4850_v29  ;;  %v2183_v56 = vpop.f32.mrb[112].mxu1 }
 0x29d   : > { %v2381_v28 = vmax.f32 %v2003_v5, 0.0  ;;  %v2359_v17 = vmax.f32 %v2176_v3, 0.0  ;;  %v2007_v53 = vadd.f32 %v2006_v34, %v4008_v47  ;;  %v2180_v57 = vadd.f32 %v2179_v27, %v4850_v29  ;;  %2667 = vadd.xlane.f32.xlu0 %v2666_v20 }
 0x29e   : > { %v4496_v2 = vmax.f32 %v2378_v31, %v2380_v1  ;;  %v2522_v41 = vmax.f32 %v4401_v50, %v2358_v10  ;;  %v2386_v38 = vmax.f32 %v2005_v0, 0.0  ;;  %v2364_v12 = vmax.f32 %v2178_v60, 0.0 }
 0x29f   : > { %v4504_v29 = vmax.f32 %v2379_v23, %v2381_v28  ;;  %v2523_v8 = vmax.f32 %v4409_v18, %v2359_v17  ;;  %v2387_v21 = vmax.f32 %v2007_v53, 0.0  ;;  %v2365_v13 = vmax.f32 %v2180_v57, 0.0  ;;  %v4873_v23 = vld [vmem:[#allocation18_spill] sm:$0xff] }
 0x2a0   : > { %v4512_v31 = vmax.f32 %v2384_v26, %v2386_v38  ;;  %v2524_v50 = vmax.f32 %v4417_v24, %v2364_v12  ;;  %v2669_v32 = vadd.f32 %v2585_v59, %v2584_v6  ;;  %v2586_v5 = vmul.f32 %v2522_v41, %v388_v19  ;;  %v2010_v26 = vpop.f32.mrb[116].mxu0  ;;  %v2185_v59 = vpop.f32.mrb[113].mxu1 }
 0x2a1   : > { %v4520_v18 = vadd.f32 %v4873_v23, %v4463_v42  ;;  %v4524_v3 = vmax.f32 %v2385_v4, %v2387_v21  ;;  %v2525_v43 = vmax.f32 %v4425_v25, %v2365_v13  ;;  %v2587_v11 = vmul.f32 %v2523_v8, %v389_v9  ;;  %v2012_v20 = vpop.f32.mrb[117].mxu0  ;;  %v2187_v60 = vpop.f32.mrb[114].mxu1 }
 0x2a2   : > { %2670 = vadd.xlane.f32.xlu1 %v2669_v32  ;;  %v2011_v24 = vadd.f32 %v2010_v26, %v4213_v54  ;;  %v2184_v6 = vadd.f32 %v2183_v56, %v4860_v45  ;;  %v2588_v1 = vmul.f32 %v2524_v50, %v390_v30  ;;  %v2403_v10 = vmax.f32 %v4436_v61, 0.0  ;;  %v2014_v4 = vpop.f32.mrb[118].mxu0  ;;  %v2189_v19 = vpop.f32.mrb[115].mxu1  ;;  %v393_v50 = vld [vmem:[%s4649_s5 + $0x188] sm:$0xff] }
 0x2a3   : > { %v2013_v0 = vadd.f32 %v2012_v20, %v4213_v54  ;;  %v2186_v22 = vadd.f32 %v2185_v59, %v4860_v45  ;;  %v2672_v25 = vadd.f32 %v2587_v11, %v2586_v5  ;;  %v2589_v34 = vmul.f32 %v2525_v43, %v391_v51  ;;  %v2016_v57 = vpop.f32.mrb[119].mxu0  ;;  %v392_v45 = vld [vmem:[%s4649_s5 + $0x180] sm:$0xff]  ;;  %v2193_v14 = vpop.f32.mrb[116].mxu1 }
 0x2a4   : > { %v2392_v27 = vmax.f32 %v2011_v24, 0.0  ;;  %v2370_v28 = vmax.f32 %v2184_v6, 0.0  ;;  %v2015_v17 = vadd.f32 %v2014_v4, %v4279_v37  ;;  %v2188_v53 = vadd.f32 %v2187_v60, %v4862_v44  ;;  %v2020_v56 = vpop.f32.mrb[120].mxu0  ;;  %v2195_v20 = vpop.f32.mrb[117].mxu1 }
 0x2a5   : > { %v2393_v41 = vmax.f32 %v2013_v0, 0.0  ;;  %v2371_v38 = vmax.f32 %v2186_v22, 0.0  ;;  %v2017_v12 = vadd.f32 %v2016_v57, %v4279_v37  ;;  %v2190_v9 = vadd.f32 %v2189_v19, %v4862_v44  ;;  %2673 = vadd.xlane.f32.xlu0 %v2672_v25  ;;  %v2022_v6 = vpop.f32.mrb[121].mxu0 }
 0x2a6   : > { %v4541_v8 = vmax.f32 %v2390_v48, %v2392_v27  ;;  %v2526_v21 = vmax.f32 %v4449_v55, %v2370_v28  ;;  %v2398_v13 = vmax.f32 %v2015_v17, 0.0  ;;  %v2376_v30 = vmax.f32 %v2188_v53, 0.0 }
 0x2a7   : > { %v4549_v44 = vmax.f32 %v2391_v15, %v2393_v41  ;;  %v2527_v32 = vmax.f32 %v4457_v36, %v2371_v38  ;;  %v2399_v5 = vmax.f32 %v2017_v12, 0.0  ;;  %v2377_v51 = vmax.f32 %v2190_v9, 0.0  ;;  %v397_v12 = vld [vmem:[%s4649_s5 + $0x1a8] sm:$0xff] }
 0x2a8   : > { %v4557_v48 = vmax.f32 %v2396_v39, %v2398_v13  ;;  %v2528_v55 = vmax.f32 %v4467_v16, %v2376_v30  ;;  %v2675_v23 = vadd.f32 %v2589_v34, %v2588_v1  ;;  %v2590_v43 = vmul.f32 %v2526_v21, %v392_v45  ;;  %v2197_v1 = vpop.f32.mrb[118].mxu1 }
 0x2a9   : > { %v2408_v15 = vmax.f32 %v4475_v63, 0.0  ;;  %v4566_v36 = vmax.f32 %v2397_v33, %v2399_v5  ;;  %v2529_v26 = vmax.f32 %v4479_v52, %v2377_v51  ;;  %v2591_v39 = vmul.f32 %v2527_v32, %v393_v50  ;;  %v2024_v33 = vpop.f32.mrb[122].mxu0  ;;  %v2199_v34 = vpop.f32.mrb[119].mxu1  ;;  %v399_v50 = vld [vmem:[%s4649_s5 + $0x1b8] sm:$0xff] }
 0x2aa   : > { %v2409_v11 = vmax.f32 %v4520_v18, 0.0  ;;  %2676 = vadd.xlane.f32.xlu1 %v2675_v23  ;;  %v2021_v16 = vadd.f32 %v2020_v56, %v4397_v49  ;;  %v2194_v24 = vadd.f32 %v2193_v14, %v4872_v35  ;;  %v2592_v59 = vmul.f32 %v2528_v55, %v394_v46  ;;  %v2026_v25 = vpop.f32.mrb[123].mxu0 }
 0x2ab   : > { %v2023_v63 = vadd.f32 %v2022_v6, %v4397_v49  ;;  %v2196_v7 = vadd.f32 %v2195_v20, %v4872_v35  ;;  %v2678_v52 = vadd.f32 %v2591_v39, %v2590_v43  ;;  %v2593_v0 = vmul.f32 %v2529_v26, %v395_v62  ;;  %v396_v35 = vld [vmem:[%s4649_s5 + $0x1a0] sm:$0xff] }
 0x2ac   : > { %v2404_v22 = vmax.f32 %v2021_v16, 0.0  ;;  %v2382_v4 = vmax.f32 %v2194_v24, 0.0  ;;  %v2025_v18 = vadd.f32 %v2024_v33, %v4463_v42  ;;  %v2198_v60 = vadd.f32 %v2197_v1, %v4008_v47  ;;  %v400_v39 = vld [vmem:[%s4649_s5 + $0x1c0] sm:$0xff] }
 0x2ad   : > { %v2405_v27 = vmax.f32 %v2023_v63, 0.0  ;;  %v2383_v28 = vmax.f32 %v2196_v7, 0.0  ;;  %v2027_v17 = vadd.f32 %v2026_v25, %v4463_v42  ;;  %v2200_v53 = vadd.f32 %v2199_v34, %v4008_v47  ;;  %2679 = vadd.xlane.f32.xlu0 %v2678_v52 }
 0x2ae   : > { %v4583_v57 = vmax.f32 %v2402_v58, %v2404_v22  ;;  %v2530_v19 = vmax.f32 %v4496_v2, %v2382_v4  ;;  %v2410_v41 = vmax.f32 %v2025_v18, 0.0  ;;  %v2388_v38 = vmax.f32 %v2198_v60, 0.0 }
 0x2af   : > { %v2475_v47 = vmax.f32 %v2403_v10, %v2405_v27  ;;  %v2531_v9 = vmax.f32 %v4504_v29, %v2383_v28  ;;  %v2411_v45 = vmax.f32 %v2027_v17, 0.0  ;;  %v2389_v21 = vmax.f32 %v2200_v53, 0.0  ;;  %v2203_v10 = vpop.f32.mrb[120].mxu1  ;;  %v404_v28 = vld [vmem:[%s4649_s5 + $0x1e0] sm:$0xff] }
 0x2b0   : > { %v2476_v58 = vmax.f32 %v2408_v15, %v2410_v41  ;;  %v2532_v2 = vmax.f32 %v4512_v31, %v2388_v38  ;;  %v2681_v13 = vadd.f32 %v2593_v0, %v2592_v59  ;;  %v2594_v30 = vmul.f32 %v2530_v19, %v396_v35  ;;  %v2205_v51 = vpop.f32.mrb[121].mxu1 }
 0x2b1   : > { %v2477_v32 = vmax.f32 %v2409_v11, %v2411_v45  ;;  %v2533_v61 = vmax.f32 %v4524_v3, %v2389_v21  ;;  %v2595_v29 = vmul.f32 %v2531_v9, %v397_v12  ;;  %v2204_v5 = vadd.f32 %v2203_v10, %v4213_v54  ;;  %v2207_v23 = vpop.f32.mrb[122].mxu1  ;;  %v407_v12 = vld [vmem:[%s4649_s5 + $0x1f8] sm:$0xff] }
 0x2b2   : > { %2682 = vadd.xlane.f32.xlu1 %v2681_v13  ;;  %v2596_v46 = vmul.f32 %v2532_v2, %v398_v40  ;;  %v2206_v55 = vadd.f32 %v2205_v51, %v4213_v54  ;;  %v2208_v15 = vadd.f32 %v2207_v23, %v4279_v37  ;;  %v2209_v26 = vpop.f32.mrb[123].mxu1  ;;  %v401_v54 = vld [vmem:[%s4649_s5 + $0x1c8] sm:$0xff] }
 0x2b3   : > { %v2684_v31 = vadd.f32 %v2595_v29, %v2594_v30  ;;  %v2597_v43 = vmul.f32 %v2533_v61, %v399_v50  ;;  %v2394_v62 = vmax.f32 %v2204_v5, 0.0  ;;  %v2210_v14 = vadd.f32 %v2209_v26, %v4279_v37  ;;  %v402_v37 = vld [vmem:[%s4649_s5 + $0x1d0] sm:$0xff]  ;;  %v2213_v7 = vpop.f32.mrb[124].mxu1 }
 0x2b4   : > { %v2395_v56 = vmax.f32 %v2206_v55, 0.0  ;;  %v2400_v16 = vmax.f32 %v2208_v15, 0.0  ;;  %v2214_v1 = vadd.f32 %v2213_v7, %v4397_v49 }
 0x2b5   : > { %2685 = vadd.xlane.f32.xlu0 %v2684_v31  ;;  %v2687_v3 = vadd.f32 %v2597_v43, %v2596_v46  ;;  %v2534_v11 = vmax.f32 %v4541_v8, %v2394_v62  ;;  %v2401_v6 = vmax.f32 %v2210_v14, 0.0  ;;  %v403_v8 = vld [vmem:[%s4649_s5 + $0x1d8] sm:$0xff] }
 0x2b6   : > { %v2535_v24 = vmax.f32 %v4549_v44, %v2395_v56  ;;  %v2536_v20 = vmax.f32 %v4557_v48, %v2400_v16  ;;  %v2215_v44 = vpop.f32.mrb[125].mxu1  ;;  %v2406_v60 = vmax.f32 %v2214_v1, 0.0 }
 0x2b7   : > { %2688 = vadd.xlane.f32.xlu1 %v2687_v3  ;;  %v2598_v59 = vmul.f32 %v2534_v11, %v400_v39  ;;  %v2537_v63 = vmax.f32 %v4566_v36, %v2401_v6  ;;  %v2216_v0 = vadd.f32 %v2215_v44, %v4397_v49  ;;  %v2217_v22 = vpop.f32.mrb[126].mxu1  ;;  %v405_v49 = vld [vmem:[%s4649_s5 + $0x1e8] sm:$0xff] }
 0x2b8   : > { %v2599_v33 = vmul.f32 %v2535_v24, %v401_v54  ;;  %v2600_v52 = vmul.f32 %v2536_v20, %v402_v37  ;;  %v2218_v48 = vadd.f32 %v2217_v22, %v4463_v42  ;;  %v2219_v25 = vpop.f32.mrb[127].mxu1  ;;  %v2538_v17 = vmax.f32 %v4583_v57, %v2406_v60 }
 0x2b9   : > { %v2601_v18 = vmul.f32 %v2537_v63, %v403_v8  ;;  %v2407_v34 = vmax.f32 %v2216_v0, 0.0  ;;  %v2220_v27 = vadd.f32 %v2219_v25, %v4463_v42  ;;  %v406_v42 = vld [vmem:[%s4649_s5 + $0x1f0] sm:$0xff] }
 0x2ba   : > { %v2690_v4 = vadd.f32 %v2599_v33, %v2598_v59  ;;  %v2412_v53 = vmax.f32 %v2218_v48, 0.0  ;;  %v2602_v38 = vmul.f32 %v2538_v17, %v404_v28 }
 0x2bb   : > { %v2693_v36 = vadd.f32 %v2601_v18, %v2600_v52  ;;  %v2539_v35 = vmax.f32 %v2475_v47, %v2407_v34  ;;  %v2413_v19 = vmax.f32 %v2220_v27, 0.0 }
 0x2bc   : > { %2691 = vadd.xlane.f32.xlu0 %v2690_v4  ;;  %v2540_v41 = vmax.f32 %v2476_v58, %v2412_v53 }
 0x2bd   : > { %2694 = vadd.xlane.f32.xlu1 %v2693_v36  ;;  %v2541_v9 = vmax.f32 %v2477_v32, %v2413_v19  ;;  %v2603_v57 = vmul.f32 %v2539_v35, %v405_v49 }
 0x2be   : > { %v2604_v45 = vmul.f32 %v2540_v41, %v406_v42 }
 0x2bf   : > { %v2696_v21 = vadd.f32 %v2603_v57, %v2602_v38  ;;  %v2605_v40 = vmul.f32 %v2541_v9, %v407_v12 }
 0x2c1   : > { %2697 = vadd.xlane.f32.xlu0 %v2696_v21  ;;  %v2699_v2 = vadd.f32 %v2605_v40, %v2604_v45 }
 0x2c3   : > { %2700 = vadd.xlane.f32.xlu1 %v2699_v2 }
 0x2d1   : > { %v2608_v13 = vpop.xlane.xlu1 %2607 }
 0x2d6   : > { %v2611_v47 = vpop.xlane.xlu0 %2610 }
 0x2d7   : > { %v2702_v50 = vadd.f32 %v2611_v47, %v2608_v13 }
 0x2da   : > { %v2614_v30 = vpop.xlane.xlu0 %2613 }
 0x2db   : > { %v2703_v61 = vadd.f32 %v2702_v50, %v2614_v30 }
 0x2df   : > { %v2617_v10 = vpop.xlane.xlu1 %2616 }
 0x2e0   : > { %v2704_v29 = vadd.f32 %v2703_v61, %v2617_v10  ;;  %v2739_v61 = vld [vmem:[#allocation2] sm:$0x1] }
 0x2e3   : > { %v2620_v58 = vpop.xlane.xlu0 %2619 }
 0x2e4   : > { %v2705_v5 = vadd.f32 %v2704_v29, %v2620_v58 }
 0x2e8   : > { %v2623_v51 = vpop.xlane.xlu1 %2622 }
 0x2e9   : > { %v2706_v55 = vadd.f32 %v2705_v5, %v2623_v51 }
 0x2ec   : > { %v2626_v46 = vpop.xlane.xlu0 %2625 }
 0x2ed   : > { %v2707_v32 = vadd.f32 %v2706_v55, %v2626_v46 }
 0x2f1   : > { %v2629_v23 = vpop.xlane.xlu1 %2628 }
 0x2f2   : > { %v2708_v43 = vadd.f32 %v2707_v32, %v2629_v23 }
 0x2f4   : > { %v2632_v31 = vpop.xlane.xlu0 %2631 }
 0x2f5   : > { %v2709_v62 = vadd.f32 %v2708_v43, %v2632_v31 }
 0x2f9   : > { %v2635_v15 = vpop.xlane.xlu1 %2634 }
 0x2fa   : > { %v2710_v56 = vadd.f32 %v2709_v62, %v2635_v15 }
 0x2fd   : > { %v2638_v26 = vpop.xlane.xlu0 %2637 }
 0x2fe   : > { %v2711_v14 = vadd.f32 %v2710_v56, %v2638_v26 }
 0x302   : > { %v2641_v3 = vpop.xlane.xlu1 %2640 }
 0x303   : > { %v2712_v11 = vadd.f32 %v2711_v14, %v2641_v3 }
 0x306   : > { %v2644_v39 = vpop.xlane.xlu0 %2643 }
 0x307   : > { %v2713_v16 = vadd.f32 %v2712_v11, %v2644_v39 }
 0x30b   : > { %v2647_v54 = vpop.xlane.xlu1 %2646 }
 0x30c   : > { %v2714_v6 = vadd.f32 %v2713_v16, %v2647_v54 }
 0x30f   : > { %v2650_v24 = vpop.xlane.xlu0 %2649 }
 0x310   : > { %v2715_v37 = vadd.f32 %v2714_v6, %v2650_v24 }
 0x314   : > { %v2653_v20 = vpop.xlane.xlu1 %2652 }
 0x315   : > { %v2716_v8 = vadd.f32 %v2715_v37, %v2653_v20 }
 0x318   : > { %v2656_v59 = vpop.xlane.xlu0 %2655 }
 0x319   : > { %v2717_v63 = vadd.f32 %v2716_v8, %v2656_v59 }
 0x31d   : > { %v2659_v7 = vpop.xlane.xlu1 %2658 }
 0x31e   : > { %v2718_v1 = vadd.f32 %v2717_v63, %v2659_v7 }
 0x321   : > { %v2662_v33 = vpop.xlane.xlu0 %2661 }
 0x322   : > { %v2719_v44 = vadd.f32 %v2718_v1, %v2662_v33 }
 0x326   : > { %v2665_v52 = vpop.xlane.xlu1 %2664 }
 0x327   : > { %v2720_v22 = vadd.f32 %v2719_v44, %v2665_v52 }
 0x32a   : > { %v2668_v0 = vpop.xlane.xlu0 %2667 }
 0x32b   : > { %v2721_v4 = vadd.f32 %v2720_v22, %v2668_v0 }
 0x32f   : > { %v2671_v18 = vpop.xlane.xlu1 %2670 }
 0x330   : > { %v2722_v48 = vadd.f32 %v2721_v4, %v2671_v18 }
 0x332   : > { %v2674_v60 = vpop.xlane.xlu0 %2673 }
 0x333   : > { %v2723_v25 = vadd.f32 %v2722_v48, %v2674_v60 }
 0x337   : > { %v2677_v34 = vpop.xlane.xlu1 %2676 }
 0x338   : > { %v2724_v36 = vadd.f32 %v2723_v25, %v2677_v34 }
 0x33a   : > { %v2680_v27 = vpop.xlane.xlu0 %2679 }
 0x33b   : > { %v2725_v28 = vadd.f32 %v2724_v36, %v2680_v27 }
 0x33f   : > { %v2683_v17 = vpop.xlane.xlu1 %2682 }
 0x340   : > { %v2726_v49 = vadd.f32 %v2725_v28, %v2683_v17 }
 0x342   : > { %v2686_v53 = vpop.xlane.xlu0 %2685 }
 0x343   : > { %v2727_v35 = vadd.f32 %v2726_v49, %v2686_v53 }
 0x344   : > { %v2689_v19 = vpop.xlane.xlu1 %2688 }
 0x345   : > { %v2728_v41 = vadd.f32 %v2727_v35, %v2689_v19 }
 0x349   : > { %v2692_v42 = vpop.xlane.xlu0 %2691 }
 0x34a   : > { %v2729_v38 = vadd.f32 %v2728_v41, %v2692_v42  ;;  %v2695_v12 = vpop.xlane.xlu1 %2694 }
 0x34c   : > { %v2730_v9 = vadd.f32 %v2729_v38, %v2695_v12 }
 0x34e   : > { %v2698_v57 = vpop.xlane.xlu0 %2697 }
 0x34f   : > { %v2731_v45 = vadd.f32 %v2730_v9, %v2698_v57 }
 0x350   : > { %v2701_v21 = vpop.xlane.xlu1 %2700 }
 0x351   : > { %v2732_v40 = vadd.f32 %v2731_v45, %v2701_v21 }
 0x353   : > { %v2733_v2 = vrot.slane %v2732_v40, 4 }
 0x355   : > { %v2734_v47 = vadd.f32 %v2733_v2, %v2732_v40 }
 0x357   : > { %v2735_v13 = vrot.slane %v2734_v47, 2 }
 0x359   : > { %v2736_v30 = vadd.f32 %v2735_v13, %v2734_v47 }
 0x35b   : > { %v2737_v50 = vrot.slane %v2736_v30, 1 }
 0x35d   : > { %v2738_v10 = vadd.f32 %v2737_v50, %v2736_v30 }
 0x35f   : > { %v2740_v58 = vadd.f32 %v2739_v61, %v2738_v10 }
 0x361   : > { %2742 = vst.msk [vmem:[%s276_s18] sm:$0x1] %vm2741_vm4, %v2740_v58 }
 0x362 PF: > { %s19_s26 = sadd.s32 1, %s3008_s26  }
 0x363   : > { %p16_p4 = scmp.ge.s32.totalorder %s19_s26, 4  }
 0x365   :  { %18 = sbr.rel (!%p16_p4) target bundleno = 3 (0x3), region = 78 }

</bundles_post_ra>
